<compile_context>
chip_gen: v5e
topology: v5e:2x2
jax: 0.10.0
libtpu: 0.0.40
codegen_flags: <defaults>
</compile_context>

<pallas_src>
import functools

import jax
import jax.numpy as jnp
from jax.experimental import pallas as pl
from jax.experimental.pallas import tpu as pltpu


def _fused_lstm_kernel(gin_ref, wih_ref, whh_ref, b_ref,
                       hn_ref, cn_ref,
                       h_sc, c_sc,
                       *, num_layers, hidden, seq_len, t_block):
    """Fused multi-layer LSTM over one time block.

    gin_ref : (Tc, B, 4H)  precomputed layer-0 gates  x_t @ W_ih0 + b0
    wih_ref : (L, H, 4H)   input->gates weights, layers 1..L-1 (slot 0 unused)
    whh_ref : (L, H, 4H)   hidden->gates weights, all layers
    b_ref   : (L, 1, 4H)   fused biases, layers 1..L-1 (slot 0 folded into gin)
    hn_ref  : (L, B, H)    relu(h_T)  (resident output, written at last block)
    cn_ref  : (L, B, H)    c_T        (resident output, written at last block)
    h_sc/c_sc: (L, B, H) f32 VMEM scratch carrying recurrent state across grid steps.
    """
    tb = pl.program_id(0)
    H = hidden
    L = num_layers

    @pl.when(tb == 0)
    def _():
        h_sc[...] = jnp.zeros_like(h_sc)
        c_sc[...] = jnp.zeros_like(c_sc)

    # Hoist grid-invariant weight / bias loads out of the unrolled time loop.
    whh = [whh_ref[l] for l in range(L)]
    wih = [wih_ref[l] for l in range(1, L)]
    bias = [b_ref[l] for l in range(1, L)]

    def lstm_cell(gates, c_prev):
        # PyTorch gate order (i, f, g, o).  NOTE: sub-128-lane slices at small H;
        # pad H to a multiple of 128 for lane-dense slicing at realistic sizes.
        i_g = jax.nn.sigmoid(gates[:, 0 * H:1 * H])
        f_g = jax.nn.sigmoid(gates[:, 1 * H:2 * H])
        g_g = jnp.tanh(gates[:, 2 * H:3 * H])
        o_g = jax.nn.sigmoid(gates[:, 3 * H:4 * H])
        c_new = f_g * c_prev + i_g * g_g
        h_new = o_g * jnp.tanh(c_new)
        return h_new, c_new

    def step(tc_i):
        x_in = None
        for l in range(L):
            h_prev = h_sc[l]
            c_prev = c_sc[l]
            if l == 0:
                # Input projection was hoisted; only the recurrent matmul remains.
                gates = gin_ref[tc_i] + jnp.dot(
                    h_prev, whh[0], preferred_element_type=jnp.float32)
            else:
                gates = (jnp.dot(x_in, wih[l - 1],
                                 preferred_element_type=jnp.float32)
                         + jnp.dot(h_prev, whh[l],
                                   preferred_element_type=jnp.float32)
                         + bias[l - 1])
            h_new, c_new = lstm_cell(gates, c_prev)
            h_sc[l] = h_new
            c_sc[l] = c_new
            x_in = h_new

    need_guard = (seq_len % t_block) != 0
    for tc_i in range(t_block):
        if need_guard:
            t_global = tb * t_block + tc_i

            @pl.when(t_global < seq_len)
            def _(tc_i=tc_i):
                step(tc_i)
        else:
            step(tc_i)

    @pl.when(tb == pl.num_programs(0) - 1)
    def _():
        hn_ref[...] = jnp.maximum(h_sc[...], 0.0).astype(hn_ref.dtype)  # torch.relu(hn)
        cn_ref[...] = c_sc[...].astype(cn_ref.dtype)


def init_rnn_encoder_params(key, input_size, hidden_size, num_layers):
    """Deterministic init mimicking PyTorch LSTM's U(-1/sqrt(H), 1/sqrt(H)).

    Weights are stored pre-transposed: W_ih^T:(in,4H), W_hh^T:(H,4H); biases fused.
    """
    params = []
    bound = 1.0 / jnp.sqrt(jnp.float32(hidden_size))
    for layer in range(num_layers):
        in_sz = input_size if layer == 0 else hidden_size
        key, k1, k2, k3, k4 = jax.random.split(key, 5)
        w_ih = jax.random.uniform(k1, (4 * hidden_size, in_sz), jnp.float32, -bound, bound)
        w_hh = jax.random.uniform(k2, (4 * hidden_size, hidden_size), jnp.float32, -bound, bound)
        b_ih = jax.random.uniform(k3, (4 * hidden_size,), jnp.float32, -bound, bound)
        b_hh = jax.random.uniform(k4, (4 * hidden_size,), jnp.float32, -bound, bound)
        params.append((w_ih.T, w_hh.T, b_ih + b_hh))
    return params


@jax.jit
def rnn_encoder_forward(x_bti, params):
    """x_bti: (B, T, I). Returns (relu(h_n), c_n), each (num_layers, B, H)."""
    B, T, I = x_bti.shape
    L = len(params)
    H = params[0][1].shape[0]          # w_hh^T is (H, 4H)
    H4 = 4 * H

    # --- Hoisted layer-0 input projection: one MXU-friendly (B*T, I) @ (I, 4H) matmul,
    # bias folded in, computed off the serial critical path. ---
    w_ih0_t, _, b0 = params[0]
    gates0 = (x_bti.reshape(B * T, I) @ w_ih0_t + b0).reshape(B, T, H4)
    gates0 = jnp.transpose(gates0, (1, 0, 2))          # (T, B, 4H)

    # --- Block the time axis. ---
    t_block = min(T, 32)
    num_blocks = -(-T // t_block)
    t_pad = num_blocks * t_block
    if t_pad != T:
        gates0 = jnp.pad(gates0, ((0, t_pad - T), (0, 0), (0, 0)))

    # --- Stack per-layer weights for the fused kernel (slot 0 of W_ih / bias unused:
    # layer 0's input projection is already in gates0). ---
    whh_all = jnp.stack([p[1] for p in params], axis=0)          # (L, H, 4H)
    if L > 1:
        wih_all = jnp.concatenate(
            [jnp.zeros((1, H, H4), jnp.float32),
             jnp.stack([params[l][0] for l in range(1, L)], axis=0)], axis=0)
        b_all = jnp.concatenate(
            [jnp.zeros((1, 1, H4), jnp.float32),
             jnp.stack([params[l][2].reshape(1, H4) for l in range(1, L)], axis=0)], axis=0)
    else:
        wih_all = jnp.zeros((1, H, H4), jnp.float32)
        b_all = jnp.zeros((1, 1, H4), jnp.float32)

    kernel = functools.partial(_fused_lstm_kernel,
                               num_layers=L, hidden=H, seq_len=T, t_block=t_block)

    hn, cn = pl.pallas_call(
        kernel,
        out_shape=(
            jax.ShapeDtypeStruct((L, B, H), jnp.float32),
            jax.ShapeDtypeStruct((L, B, H), jnp.float32),
        ),
        grid_spec=pltpu.PrefetchScalarGridSpec(
            num_scalar_prefetch=0,
            grid=(num_blocks,),
            in_specs=[
                pl.BlockSpec((t_block, B, H4), lambda tb: (tb, 0, 0)),   # gates0 block
                pl.BlockSpec((L, H, H4), lambda tb: (0, 0, 0)),          # W_ih (layers>0)
                pl.BlockSpec((L, H, H4), lambda tb: (0, 0, 0)),          # W_hh (all layers)
                pl.BlockSpec((L, 1, H4), lambda tb: (0, 0, 0)),          # bias (layers>0)
            ],
            out_specs=[
                pl.BlockSpec((L, B, H), lambda tb: (0, 0, 0)),           # relu(h_n)
                pl.BlockSpec((L, B, H), lambda tb: (0, 0, 0)),           # c_n
            ],
            scratch_shapes=[
                pltpu.VMEM((L, B, H), jnp.float32),                      # h state
                pltpu.VMEM((L, B, H), jnp.float32),                      # c state
            ],
        ),
        compiler_params=pltpu.CompilerParams(
            dimension_semantics=("arbitrary",),   # recurrent over time; must stay arbitrary
        ),
    )(gates0, wih_all, whh_all, b_all)
    # TODO(synk): nn.LSTM inter-layer dropout is train-only; inference semantics used here.
    return hn, cn


def _reference_forward(x_bti, params):
    """Pure-JAX reference (lax.scan LSTM) for correctness checking."""
    x_tbi = jnp.transpose(x_bti, (1, 0, 2))
    B = x_bti.shape[0]
    hns, cns = [], []
    layer_in = x_tbi
    for (w_ih_t, w_hh_t, b) in params:
        H = w_hh_t.shape[0]

        def step(carry, x_t):
            h, c = carry
            gates = x_t @ w_ih_t + h @ w_hh_t + b
            i = jax.nn.sigmoid(gates[:, 0 * H:1 * H])
            f = jax.nn.sigmoid(gates[:, 1 * H:2 * H])
            g = jnp.tanh(gates[:, 2 * H:3 * H])
            o = jax.nn.sigmoid(gates[:, 3 * H:4 * H])
            c_new = f * c + i * g
            h_new = o * jnp.tanh(c_new)
            return (h_new, c_new), h_new

        init = (jnp.zeros((B, H), jnp.float32), jnp.zeros((B, H), jnp.float32))
        (h_T, c_T), ys = jax.lax.scan(step, init, layer_in)
        hns.append(jnp.maximum(h_T, 0.0))
        cns.append(c_T)
        layer_in = ys
    return jnp.stack(hns, axis=0), jnp.stack(cns, axis=0)


if __name__ == "__main__":
    # Small shapes consistent with the module's forward.
    batch, seq, input_size, hidden_size, num_layers = 2, 8, 16, 32, 2

    key = jax.random.PRNGKey(0)
    key_x, key_p = jax.random.split(key)
    x = jax.random.normal(key_x, (batch, seq, input_size), jnp.float32)
    params = init_rnn_encoder_params(key_p, input_size, hidden_size, num_layers)

    hn_relu, cell = rnn_encoder_forward(x, params)
    hn_relu = jax.block_until_ready(hn_relu)
    cell = jax.block_until_ready(cell)

    assert hn_relu.shape == (num_layers, batch, hidden_size)
    assert cell.shape == (num_layers, batch, hidden_size)

    # Verify against a pure-JAX reference.
    hn_ref, cn_ref = _reference_forward(x, params)
    assert jnp.allclose(hn_relu, hn_ref, atol=1e-4, rtol=1e-4), (
        float(jnp.max(jnp.abs(hn_relu - hn_ref))))
    assert jnp.allclose(cell, cn_ref, atol=1e-4, rtol=1e-4), (
        float(jnp.max(jnp.abs(cell - cn_ref))))

    print("KERNEL_OK")
</pallas_src>

<mosaic_0001>
module attributes {stable_mosaic.version = 11 : i64} {
  func.func @_fused_lstm_kernel(%arg0: i32, %arg1: memref<8x2x128xf32, #tpu.memory_space<vmem>>, %arg2: memref<2x32x128xf32, #tpu.memory_space<vmem>>, %arg3: memref<2x32x128xf32, #tpu.memory_space<vmem>>, %arg4: memref<2x1x128xf32, #tpu.memory_space<vmem>>, %arg5: memref<2x2x32xf32, #tpu.memory_space<vmem>>, %arg6: memref<2x2x32xf32, #tpu.memory_space<vmem>>, %arg7: memref<2x2x32xf32, #tpu.memory_space<vmem>>, %arg8: memref<2x2x32xf32, #tpu.memory_space<vmem>>) attributes {dimension_semantics = [#tpu.dimension_semantics<arbitrary>], iteration_bounds = array<i64: 1>, scalar_prefetch = 0 : i64, scratch_operands = 2 : i64, tpu.core_type = #tpu.core_type<tc>, window_params = [{transform_indices = @transform_0, window_bounds = array<i64: 8, 2, 128>}, {pipeline_mode = #tpu.pipeline_mode<synchronous>, transform_indices = @transform_1, window_bounds = array<i64: 2, 32, 128>}, {pipeline_mode = #tpu.pipeline_mode<synchronous>, transform_indices = @transform_2, window_bounds = array<i64: 2, 32, 128>}, {pipeline_mode = #tpu.pipeline_mode<synchronous>, transform_indices = @transform_3, window_bounds = array<i64: 2, 1, 128>}, {pipeline_mode = #tpu.pipeline_mode<synchronous>, transform_indices = @transform_4, window_bounds = array<i64: 2, 2, 32>}, {pipeline_mode = #tpu.pipeline_mode<synchronous>, transform_indices = @transform_5, window_bounds = array<i64: 2, 2, 32>}]} {
    %c0_i32 = arith.constant 0 : i32
    %0 = arith.cmpi eq, %arg0, %c0_i32 : i32
    %1 = arith.extui %0 : i1 to i32
    %c0_i32_0 = arith.constant 0 : i32
    %2 = arith.cmpi ne, %1, %c0_i32_0 : i32
    scf.if %2 {
      %cst_294 = arith.constant 0.000000e+00 : f32
      %646 = vector.broadcast %cst_294 : f32 to vector<2x2x32xf32>
      %c0_295 = arith.constant 0 : index
      %c0_296 = arith.constant 0 : index
      %c0_297 = arith.constant 0 : index
      %647 = vector.load %arg7[%c0_295, %c0_296, %c0_297] : memref<2x2x32xf32, #tpu.memory_space<vmem>>, vector<2x2x32xf32>
      tpu.vector_store %arg7[%c0_295, %c0_296, %c0_297], %646 {strides = array<i32>} : memref<2x2x32xf32, #tpu.memory_space<vmem>>, vector<2x2x32xf32>,
      %cst_298 = arith.constant 0.000000e+00 : f32
      %648 = vector.broadcast %cst_298 : f32 to vector<2x2x32xf32>
      %c0_299 = arith.constant 0 : index
      %c0_300 = arith.constant 0 : index
      %c0_301 = arith.constant 0 : index
      %649 = vector.load %arg8[%c0_299, %c0_300, %c0_301] : memref<2x2x32xf32, #tpu.memory_space<vmem>>, vector<2x2x32xf32>
      tpu.vector_store %arg8[%c0_299, %c0_300, %c0_301], %648 {strides = array<i32>} : memref<2x2x32xf32, #tpu.memory_space<vmem>>, vector<2x2x32xf32>,
    } else {
    }
    %c0 = arith.constant 0 : index
    %c0_1 = arith.constant 0 : index
    %c0_2 = arith.constant 0 : index
    %3 = vector.load %arg3[%c0, %c0_1, %c0_2] : memref<2x32x128xf32, #tpu.memory_space<vmem>>, vector<1x32x128xf32>
    %4 = vector.shape_cast %3 : vector<1x32x128xf32> to vector<32x128xf32>
    %c1 = arith.constant 1 : index
    %c0_3 = arith.constant 0 : index
    %c0_4 = arith.constant 0 : index
    %5 = vector.load %arg3[%c1, %c0_3, %c0_4] : memref<2x32x128xf32, #tpu.memory_space<vmem>>, vector<1x32x128xf32>
    %6 = vector.shape_cast %5 : vector<1x32x128xf32> to vector<32x128xf32>
    %c1_5 = arith.constant 1 : index
    %c0_6 = arith.constant 0 : index
    %c0_7 = arith.constant 0 : index
    %7 = vector.load %arg2[%c1_5, %c0_6, %c0_7] : memref<2x32x128xf32, #tpu.memory_space<vmem>>, vector<1x32x128xf32>
    %8 = vector.shape_cast %7 : vector<1x32x128xf32> to vector<32x128xf32>
    %c1_8 = arith.constant 1 : index
    %c0_9 = arith.constant 0 : index
    %c0_10 = arith.constant 0 : index
    %9 = vector.load %arg4[%c1_8, %c0_9, %c0_10] : memref<2x1x128xf32, #tpu.memory_space<vmem>>, vector<1x1x128xf32>
    %10 = vector.shape_cast %9 : vector<1x1x128xf32> to vector<1x128xf32>
    %c0_11 = arith.constant 0 : index
    %c0_12 = arith.constant 0 : index
    %c0_13 = arith.constant 0 : index
    %11 = vector.load %arg7[%c0_11, %c0_12, %c0_13] : memref<2x2x32xf32, #tpu.memory_space<vmem>>, vector<1x2x32xf32>
    %12 = vector.shape_cast %11 : vector<1x2x32xf32> to vector<2x32xf32>
    %c0_14 = arith.constant 0 : index
    %c0_15 = arith.constant 0 : index
    %c0_16 = arith.constant 0 : index
    %13 = vector.load %arg8[%c0_14, %c0_15, %c0_16] : memref<2x2x32xf32, #tpu.memory_space<vmem>>, vector<1x2x32xf32>
    %14 = vector.shape_cast %13 : vector<1x2x32xf32> to vector<2x32xf32>
    %c0_17 = arith.constant 0 : index
    %c0_18 = arith.constant 0 : index
    %c0_19 = arith.constant 0 : index
    %15 = vector.load %arg1[%c0_17, %c0_18, %c0_19] : memref<8x2x128xf32, #tpu.memory_space<vmem>>, vector<1x2x128xf32>
    %16 = vector.shape_cast %15 : vector<1x2x128xf32> to vector<2x128xf32>
    %cst = arith.constant dense<0.000000e+00> : vector<2x128xf32>
    %17 = tpu.matmul %12, %4, %cst {dimension_numbers = #tpu.dot_dimension_numbers<[1], [0], [0], [1], [0, 0, 1, 1], [], []>} : vector<2x32xf32>, vector<32x128xf32>, vector<2x128xf32> -> vector<2x128xf32>
    %18 = arith.addf %16, %17 : vector<2x128xf32>
    %19 = vector.extract_strided_slice %18 {offsets = [0, 0], sizes = [2, 32], strides = [1, 1]} : vector<2x128xf32> to vector<2x32xf32>
    %20 = arith.negf %19 : vector<2x32xf32>
    %21 = math.exp %20 : vector<2x32xf32>
    %cst_20 = arith.constant 1.000000e+00 : f32
    %22 = vector.broadcast %cst_20 : f32 to vector<2x32xf32>
    %23 = arith.addf %22, %21 : vector<2x32xf32>
    %24 = arith.divf %22, %23 : vector<2x32xf32>
    %25 = vector.extract_strided_slice %18 {offsets = [0, 32], sizes = [2, 32], strides = [1, 1]} : vector<2x128xf32> to vector<2x32xf32>
    %26 = arith.negf %25 : vector<2x32xf32>
    %27 = math.exp %26 : vector<2x32xf32>
    %cst_21 = arith.constant 1.000000e+00 : f32
    %28 = vector.broadcast %cst_21 : f32 to vector<2x32xf32>
    %29 = arith.addf %28, %27 : vector<2x32xf32>
    %30 = arith.divf %28, %29 : vector<2x32xf32>
    %31 = vector.extract_strided_slice %18 {offsets = [0, 64], sizes = [2, 32], strides = [1, 1]} : vector<2x128xf32> to vector<2x32xf32>
    %32 = math.tanh %31 : vector<2x32xf32>
    %33 = vector.extract_strided_slice %18 {offsets = [0, 96], sizes = [2, 32], strides = [1, 1]} : vector<2x128xf32> to vector<2x32xf32>
    %34 = arith.negf %33 : vector<2x32xf32>
    %35 = math.exp %34 : vector<2x32xf32>
    %cst_22 = arith.constant 1.000000e+00 : f32
    %36 = vector.broadcast %cst_22 : f32 to vector<2x32xf32>
    %37 = arith.addf %36, %35 : vector<2x32xf32>
    %38 = arith.divf %36, %37 : vector<2x32xf32>
    %39 = arith.mulf %30, %14 : vector<2x32xf32>
    %40 = arith.mulf %24, %32 : vector<2x32xf32>
    %41 = arith.addf %39, %40 : vector<2x32xf32>
    %42 = math.tanh %41 : vector<2x32xf32>
    %43 = arith.mulf %38, %42 : vector<2x32xf32>
    %c0_23 = arith.constant 0 : index
    %c0_24 = arith.constant 0 : index
    %c0_25 = arith.constant 0 : index
    %44 = vector.load %arg7[%c0_23, %c0_24, %c0_25] : memref<2x2x32xf32, #tpu.memory_space<vmem>>, vector<1x2x32xf32>
    %45 = vector.shape_cast %44 : vector<1x2x32xf32> to vector<2x32xf32>
    %46 = vector.shape_cast %43 : vector<2x32xf32> to vector<1x2x32xf32>
    tpu.vector_store %arg7[%c0_23, %c0_24, %c0_25], %46 {strides = array<i32>} : memref<2x2x32xf32, #tpu.memory_space<vmem>>, vector<1x2x32xf32>,
    %c0_26 = arith.constant 0 : index
    %c0_27 = arith.constant 0 : index
    %c0_28 = arith.constant 0 : index
    %47 = vector.load %arg8[%c0_26, %c0_27, %c0_28] : memref<2x2x32xf32, #tpu.memory_space<vmem>>, vector<1x2x32xf32>
    %48 = vector.shape_cast %47 : vector<1x2x32xf32> to vector<2x32xf32>
    %49 = vector.shape_cast %41 : vector<2x32xf32> to vector<1x2x32xf32>
    tpu.vector_store %arg8[%c0_26, %c0_27, %c0_28], %49 {strides = array<i32>} : memref<2x2x32xf32, #tpu.memory_space<vmem>>, vector<1x2x32xf32>,
    %c1_29 = arith.constant 1 : index
    %c0_30 = arith.constant 0 : index
    %c0_31 = arith.constant 0 : index
    %50 = vector.load %arg7[%c1_29, %c0_30, %c0_31] : memref<2x2x32xf32, #tpu.memory_space<vmem>>, vector<1x2x32xf32>
    %51 = vector.shape_cast %50 : vector<1x2x32xf32> to vector<2x32xf32>
    %c1_32 = arith.constant 1 : index
    %c0_33 = arith.constant 0 : index
    %c0_34 = arith.constant 0 : index
    %52 = vector.load %arg8[%c1_32, %c0_33, %c0_34] : memref<2x2x32xf32, #tpu.memory_space<vmem>>, vector<1x2x32xf32>
    %53 = vector.shape_cast %52 : vector<1x2x32xf32> to vector<2x32xf32>
    %cst_35 = arith.constant dense<0.000000e+00> : vector<2x128xf32>
    %54 = tpu.matmul %43, %8, %cst_35 {dimension_numbers = #tpu.dot_dimension_numbers<[1], [0], [0], [1], [0, 0, 1, 1], [], []>} : vector<2x32xf32>, vector<32x128xf32>, vector<2x128xf32> -> vector<2x128xf32>
    %cst_36 = arith.constant dense<0.000000e+00> : vector<2x128xf32>
    %55 = tpu.matmul %51, %6, %cst_36 {dimension_numbers = #tpu.dot_dimension_numbers<[1], [0], [0], [1], [0, 0, 1, 1], [], []>} : vector<2x32xf32>, vector<32x128xf32>, vector<2x128xf32> -> vector<2x128xf32>
    %56 = arith.addf %54, %55 : vector<2x128xf32>
    %57 = vector.broadcast %10 : vector<1x128xf32> to vector<2x128xf32>
    %58 = arith.addf %56, %57 : vector<2x128xf32>
    %59 = vector.extract_strided_slice %58 {offsets = [0, 0], sizes = [2, 32], strides = [1, 1]} : vector<2x128xf32> to vector<2x32xf32>
    %60 = arith.negf %59 : vector<2x32xf32>
    %61 = math.exp %60 : vector<2x32xf32>
    %cst_37 = arith.constant 1.000000e+00 : f32
    %62 = vector.broadcast %cst_37 : f32 to vector<2x32xf32>
    %63 = arith.addf %62, %61 : vector<2x32xf32>
    %64 = arith.divf %62, %63 : vector<2x32xf32>
    %65 = vector.extract_strided_slice %58 {offsets = [0, 32], sizes = [2, 32], strides = [1, 1]} : vector<2x128xf32> to vector<2x32xf32>
    %66 = arith.negf %65 : vector<2x32xf32>
    %67 = math.exp %66 : vector<2x32xf32>
    %cst_38 = arith.constant 1.000000e+00 : f32
    %68 = vector.broadcast %cst_38 : f32 to vector<2x32xf32>
    %69 = arith.addf %68, %67 : vector<2x32xf32>
    %70 = arith.divf %68, %69 : vector<2x32xf32>
    %71 = vector.extract_strided_slice %58 {offsets = [0, 64], sizes = [2, 32], strides = [1, 1]} : vector<2x128xf32> to vector<2x32xf32>
    %72 = math.tanh %71 : vector<2x32xf32>
    %73 = vector.extract_strided_slice %58 {offsets = [0, 96], sizes = [2, 32], strides = [1, 1]} : vector<2x128xf32> to vector<2x32xf32>
    %74 = arith.negf %73 : vector<2x32xf32>
    %75 = math.exp %74 : vector<2x32xf32>
    %cst_39 = arith.constant 1.000000e+00 : f32
    %76 = vector.broadcast %cst_39 : f32 to vector<2x32xf32>
    %77 = arith.addf %76, %75 : vector<2x32xf32>
    %78 = arith.divf %76, %77 : vector<2x32xf32>
    %79 = arith.mulf %70, %53 : vector<2x32xf32>
    %80 = arith.mulf %64, %72 : vector<2x32xf32>
    %81 = arith.addf %79, %80 : vector<2x32xf32>
    %82 = math.tanh %81 : vector<2x32xf32>
    %83 = arith.mulf %78, %82 : vector<2x32xf32>
    %c1_40 = arith.constant 1 : index
    %c0_41 = arith.constant 0 : index
    %c0_42 = arith.constant 0 : index
    %84 = vector.load %arg7[%c1_40, %c0_41, %c0_42] : memref<2x2x32xf32, #tpu.memory_space<vmem>>, vector<1x2x32xf32>
    %85 = vector.shape_cast %84 : vector<1x2x32xf32> to vector<2x32xf32>
    %86 = vector.shape_cast %83 : vector<2x32xf32> to vector<1x2x32xf32>
    tpu.vector_store %arg7[%c1_40, %c0_41, %c0_42], %86 {strides = array<i32>} : memref<2x2x32xf32, #tpu.memory_space<vmem>>, vector<1x2x32xf32>,
    %c1_43 = arith.constant 1 : index
    %c0_44 = arith.constant 0 : index
    %c0_45 = arith.constant 0 : index
    %87 = vector.load %arg8[%c1_43, %c0_44, %c0_45] : memref<2x2x32xf32, #tpu.memory_space<vmem>>, vector<1x2x32xf32>
    %88 = vector.shape_cast %87 : vector<1x2x32xf32> to vector<2x32xf32>
    %89 = vector.shape_cast %81 : vector<2x32xf32> to vector<1x2x32xf32>
    tpu.vector_store %arg8[%c1_43, %c0_44, %c0_45], %89 {strides = array<i32>} : memref<2x2x32xf32, #tpu.memory_space<vmem>>, vector<1x2x32xf32>,
    %c0_46 = arith.constant 0 : index
    %c0_47 = arith.constant 0 : index
    %c0_48 = arith.constant 0 : index
    %90 = vector.load %arg7[%c0_46, %c0_47, %c0_48] : memref<2x2x32xf32, #tpu.memory_space<vmem>>, vector<1x2x32xf32>
    %91 = vector.shape_cast %90 : vector<1x2x32xf32> to vector<2x32xf32>
    %c0_49 = arith.constant 0 : index
    %c0_50 = arith.constant 0 : index
    %c0_51 = arith.constant 0 : index
    %92 = vector.load %arg8[%c0_49, %c0_50, %c0_51] : memref<2x2x32xf32, #tpu.memory_space<vmem>>, vector<1x2x32xf32>
    %93 = vector.shape_cast %92 : vector<1x2x32xf32> to vector<2x32xf32>
    %c1_52 = arith.constant 1 : index
    %c0_53 = arith.constant 0 : index
    %c0_54 = arith.constant 0 : index
    %94 = vector.load %arg1[%c1_52, %c0_53, %c0_54] : memref<8x2x128xf32, #tpu.memory_space<vmem>>, vector<1x2x128xf32>
    %95 = vector.shape_cast %94 : vector<1x2x128xf32> to vector<2x128xf32>
    %cst_55 = arith.constant dense<0.000000e+00> : vector<2x128xf32>
    %96 = tpu.matmul %91, %4, %cst_55 {dimension_numbers = #tpu.dot_dimension_numbers<[1], [0], [0], [1], [0, 0, 1, 1], [], []>} : vector<2x32xf32>, vector<32x128xf32>, vector<2x128xf32> -> vector<2x128xf32>
    %97 = arith.addf %95, %96 : vector<2x128xf32>
    %98 = vector.extract_strided_slice %97 {offsets = [0, 0], sizes = [2, 32], strides = [1, 1]} : vector<2x128xf32> to vector<2x32xf32>
    %99 = arith.negf %98 : vector<2x32xf32>
    %100 = math.exp %99 : vector<2x32xf32>
    %cst_56 = arith.constant 1.000000e+00 : f32
    %101 = vector.broadcast %cst_56 : f32 to vector<2x32xf32>
    %102 = arith.addf %101, %100 : vector<2x32xf32>
    %103 = arith.divf %101, %102 : vector<2x32xf32>
    %104 = vector.extract_strided_slice %97 {offsets = [0, 32], sizes = [2, 32], strides = [1, 1]} : vector<2x128xf32> to vector<2x32xf32>
    %105 = arith.negf %104 : vector<2x32xf32>
    %106 = math.exp %105 : vector<2x32xf32>
    %cst_57 = arith.constant 1.000000e+00 : f32
    %107 = vector.broadcast %cst_57 : f32 to vector<2x32xf32>
    %108 = arith.addf %107, %106 : vector<2x32xf32>
    %109 = arith.divf %107, %108 : vector<2x32xf32>
    %110 = vector.extract_strided_slice %97 {offsets = [0, 64], sizes = [2, 32], strides = [1, 1]} : vector<2x128xf32> to vector<2x32xf32>
    %111 = math.tanh %110 : vector<2x32xf32>
    %112 = vector.extract_strided_slice %97 {offsets = [0, 96], sizes = [2, 32], strides = [1, 1]} : vector<2x128xf32> to vector<2x32xf32>
    %113 = arith.negf %112 : vector<2x32xf32>
    %114 = math.exp %113 : vector<2x32xf32>
    %cst_58 = arith.constant 1.000000e+00 : f32
    %115 = vector.broadcast %cst_58 : f32 to vector<2x32xf32>
    %116 = arith.addf %115, %114 : vector<2x32xf32>
    %117 = arith.divf %115, %116 : vector<2x32xf32>
    %118 = arith.mulf %109, %93 : vector<2x32xf32>
    %119 = arith.mulf %103, %111 : vector<2x32xf32>
    %120 = arith.addf %118, %119 : vector<2x32xf32>
    %121 = math.tanh %120 : vector<2x32xf32>
    %122 = arith.mulf %117, %121 : vector<2x32xf32>
    %c0_59 = arith.constant 0 : index
    %c0_60 = arith.constant 0 : index
    %c0_61 = arith.constant 0 : index
    %123 = vector.load %arg7[%c0_59, %c0_60, %c0_61] : memref<2x2x32xf32, #tpu.memory_space<vmem>>, vector<1x2x32xf32>
    %124 = vector.shape_cast %123 : vector<1x2x32xf32> to vector<2x32xf32>
    %125 = vector.shape_cast %122 : vector<2x32xf32> to vector<1x2x32xf32>
    tpu.vector_store %arg7[%c0_59, %c0_60, %c0_61], %125 {strides = array<i32>} : memref<2x2x32xf32, #tpu.memory_space<vmem>>, vector<1x2x32xf32>,
    %c0_62 = arith.constant 0 : index
    %c0_63 = arith.constant 0 : index
    %c0_64 = arith.constant 0 : index
    %126 = vector.load %arg8[%c0_62, %c0_63, %c0_64] : memref<2x2x32xf32, #tpu.memory_space<vmem>>, vector<1x2x32xf32>
    %127 = vector.shape_cast %126 : vector<1x2x32xf32> to vector<2x32xf32>
    %128 = vector.shape_cast %120 : vector<2x32xf32> to vector<1x2x32xf32>
    tpu.vector_store %arg8[%c0_62, %c0_63, %c0_64], %128 {strides = array<i32>} : memref<2x2x32xf32, #tpu.memory_space<vmem>>, vector<1x2x32xf32>,
    %c1_65 = arith.constant 1 : index
    %c0_66 = arith.constant 0 : index
    %c0_67 = arith.constant 0 : index
    %129 = vector.load %arg7[%c1_65, %c0_66, %c0_67] : memref<2x2x32xf32, #tpu.memory_space<vmem>>, vector<1x2x32xf32>
    %130 = vector.shape_cast %129 : vector<1x2x32xf32> to vector<2x32xf32>
    %c1_68 = arith.constant 1 : index
    %c0_69 = arith.constant 0 : index
    %c0_70 = arith.constant 0 : index
    %131 = vector.load %arg8[%c1_68, %c0_69, %c0_70] : memref<2x2x32xf32, #tpu.memory_space<vmem>>, vector<1x2x32xf32>
    %132 = vector.shape_cast %131 : vector<1x2x32xf32> to vector<2x32xf32>
    %cst_71 = arith.constant dense<0.000000e+00> : vector<2x128xf32>
    %133 = tpu.matmul %122, %8, %cst_71 {dimension_numbers = #tpu.dot_dimension_numbers<[1], [0], [0], [1], [0, 0, 1, 1], [], []>} : vector<2x32xf32>, vector<32x128xf32>, vector<2x128xf32> -> vector<2x128xf32>
    %cst_72 = arith.constant dense<0.000000e+00> : vector<2x128xf32>
    %134 = tpu.matmul %130, %6, %cst_72 {dimension_numbers = #tpu.dot_dimension_numbers<[1], [0], [0], [1], [0, 0, 1, 1], [], []>} : vector<2x32xf32>, vector<32x128xf32>, vector<2x128xf32> -> vector<2x128xf32>
    %135 = arith.addf %133, %134 : vector<2x128xf32>
    %136 = vector.broadcast %10 : vector<1x128xf32> to vector<2x128xf32>
    %137 = arith.addf %135, %136 : vector<2x128xf32>
    %138 = vector.extract_strided_slice %137 {offsets = [0, 0], sizes = [2, 32], strides = [1, 1]} : vector<2x128xf32> to vector<2x32xf32>
    %139 = arith.negf %138 : vector<2x32xf32>
    %140 = math.exp %139 : vector<2x32xf32>
    %cst_73 = arith.constant 1.000000e+00 : f32
    %141 = vector.broadcast %cst_73 : f32 to vector<2x32xf32>
    %142 = arith.addf %141, %140 : vector<2x32xf32>
    %143 = arith.divf %141, %142 : vector<2x32xf32>
    %144 = vector.extract_strided_slice %137 {offsets = [0, 32], sizes = [2, 32], strides = [1, 1]} : vector<2x128xf32> to vector<2x32xf32>
    %145 = arith.negf %144 : vector<2x32xf32>
    %146 = math.exp %145 : vector<2x32xf32>
    %cst_74 = arith.constant 1.000000e+00 : f32
    %147 = vector.broadcast %cst_74 : f32 to vector<2x32xf32>
    %148 = arith.addf %147, %146 : vector<2x32xf32>
    %149 = arith.divf %147, %148 : vector<2x32xf32>
    %150 = vector.extract_strided_slice %137 {offsets = [0, 64], sizes = [2, 32], strides = [1, 1]} : vector<2x128xf32> to vector<2x32xf32>
    %151 = math.tanh %150 : vector<2x32xf32>
    %152 = vector.extract_strided_slice %137 {offsets = [0, 96], sizes = [2, 32], strides = [1, 1]} : vector<2x128xf32> to vector<2x32xf32>
    %153 = arith.negf %152 : vector<2x32xf32>
    %154 = math.exp %153 : vector<2x32xf32>
    %cst_75 = arith.constant 1.000000e+00 : f32
    %155 = vector.broadcast %cst_75 : f32 to vector<2x32xf32>
    %156 = arith.addf %155, %154 : vector<2x32xf32>
    %157 = arith.divf %155, %156 : vector<2x32xf32>
    %158 = arith.mulf %149, %132 : vector<2x32xf32>
    %159 = arith.mulf %143, %151 : vector<2x32xf32>
    %160 = arith.addf %158, %159 : vector<2x32xf32>
    %161 = math.tanh %160 : vector<2x32xf32>
    %162 = arith.mulf %157, %161 : vector<2x32xf32>
    %c1_76 = arith.constant 1 : index
    %c0_77 = arith.constant 0 : index
    %c0_78 = arith.constant 0 : index
    %163 = vector.load %arg7[%c1_76, %c0_77, %c0_78] : memref<2x2x32xf32, #tpu.memory_space<vmem>>, vector<1x2x32xf32>
    %164 = vector.shape_cast %163 : vector<1x2x32xf32> to vector<2x32xf32>
    %165 = vector.shape_cast %162 : vector<2x32xf32> to vector<1x2x32xf32>
    tpu.vector_store %arg7[%c1_76, %c0_77, %c0_78], %165 {strides = array<i32>} : memref<2x2x32xf32, #tpu.memory_space<vmem>>, vector<1x2x32xf32>,
    %c1_79 = arith.constant 1 : index
    %c0_80 = arith.constant 0 : index
    %c0_81 = arith.constant 0 : index
    %166 = vector.load %arg8[%c1_79, %c0_80, %c0_81] : memref<2x2x32xf32, #tpu.memory_space<vmem>>, vector<1x2x32xf32>
    %167 = vector.shape_cast %166 : vector<1x2x32xf32> to vector<2x32xf32>
    %168 = vector.shape_cast %160 : vector<2x32xf32> to vector<1x2x32xf32>
    tpu.vector_store %arg8[%c1_79, %c0_80, %c0_81], %168 {strides = array<i32>} : memref<2x2x32xf32, #tpu.memory_space<vmem>>, vector<1x2x32xf32>,
    %c0_82 = arith.constant 0 : index
    %c0_83 = arith.constant 0 : index
    %c0_84 = arith.constant 0 : index
    %169 = vector.load %arg7[%c0_82, %c0_83, %c0_84] : memref<2x2x32xf32, #tpu.memory_space<vmem>>, vector<1x2x32xf32>
    %170 = vector.shape_cast %169 : vector<1x2x32xf32> to vector<2x32xf32>
    %c0_85 = arith.constant 0 : index
    %c0_86 = arith.constant 0 : index
    %c0_87 = arith.constant 0 : index
    %171 = vector.load %arg8[%c0_85, %c0_86, %c0_87] : memref<2x2x32xf32, #tpu.memory_space<vmem>>, vector<1x2x32xf32>
    %172 = vector.shape_cast %171 : vector<1x2x32xf32> to vector<2x32xf32>
    %c2 = arith.constant 2 : index
    %c0_88 = arith.constant 0 : index
    %c0_89 = arith.constant 0 : index
    %173 = vector.load %arg1[%c2, %c0_88, %c0_89] : memref<8x2x128xf32, #tpu.memory_space<vmem>>, vector<1x2x128xf32>
    %174 = vector.shape_cast %173 : vector<1x2x128xf32> to vector<2x128xf32>
    %cst_90 = arith.constant dense<0.000000e+00> : vector<2x128xf32>
    %175 = tpu.matmul %170, %4, %cst_90 {dimension_numbers = #tpu.dot_dimension_numbers<[1], [0], [0], [1], [0, 0, 1, 1], [], []>} : vector<2x32xf32>, vector<32x128xf32>, vector<2x128xf32> -> vector<2x128xf32>
    %176 = arith.addf %174, %175 : vector<2x128xf32>
    %177 = vector.extract_strided_slice %176 {offsets = [0, 0], sizes = [2, 32], strides = [1, 1]} : vector<2x128xf32> to vector<2x32xf32>
    %178 = arith.negf %177 : vector<2x32xf32>
    %179 = math.exp %178 : vector<2x32xf32>
    %cst_91 = arith.constant 1.000000e+00 : f32
    %180 = vector.broadcast %cst_91 : f32 to vector<2x32xf32>
    %181 = arith.addf %180, %179 : vector<2x32xf32>
    %182 = arith.divf %180, %181 : vector<2x32xf32>
    %183 = vector.extract_strided_slice %176 {offsets = [0, 32], sizes = [2, 32], strides = [1, 1]} : vector<2x128xf32> to vector<2x32xf32>
    %184 = arith.negf %183 : vector<2x32xf32>
    %185 = math.exp %184 : vector<2x32xf32>
    %cst_92 = arith.constant 1.000000e+00 : f32
    %186 = vector.broadcast %cst_92 : f32 to vector<2x32xf32>
    %187 = arith.addf %186, %185 : vector<2x32xf32>
    %188 = arith.divf %186, %187 : vector<2x32xf32>
    %189 = vector.extract_strided_slice %176 {offsets = [0, 64], sizes = [2, 32], strides = [1, 1]} : vector<2x128xf32> to vector<2x32xf32>
    %190 = math.tanh %189 : vector<2x32xf32>
    %191 = vector.extract_strided_slice %176 {offsets = [0, 96], sizes = [2, 32], strides = [1, 1]} : vector<2x128xf32> to vector<2x32xf32>
    %192 = arith.negf %191 : vector<2x32xf32>
    %193 = math.exp %192 : vector<2x32xf32>
    %cst_93 = arith.constant 1.000000e+00 : f32
    %194 = vector.broadcast %cst_93 : f32 to vector<2x32xf32>
    %195 = arith.addf %194, %193 : vector<2x32xf32>
    %196 = arith.divf %194, %195 : vector<2x32xf32>
    %197 = arith.mulf %188, %172 : vector<2x32xf32>
    %198 = arith.mulf %182, %190 : vector<2x32xf32>
    %199 = arith.addf %197, %198 : vector<2x32xf32>
    %200 = math.tanh %199 : vector<2x32xf32>
    %201 = arith.mulf %196, %200 : vector<2x32xf32>
    %c0_94 = arith.constant 0 : index
    %c0_95 = arith.constant 0 : index
    %c0_96 = arith.constant 0 : index
    %202 = vector.load %arg7[%c0_94, %c0_95, %c0_96] : memref<2x2x32xf32, #tpu.memory_space<vmem>>, vector<1x2x32xf32>
    %203 = vector.shape_cast %202 : vector<1x2x32xf32> to vector<2x32xf32>
    %204 = vector.shape_cast %201 : vector<2x32xf32> to vector<1x2x32xf32>
    tpu.vector_store %arg7[%c0_94, %c0_95, %c0_96], %204 {strides = array<i32>} : memref<2x2x32xf32, #tpu.memory_space<vmem>>, vector<1x2x32xf32>,
    %c0_97 = arith.constant 0 : index
    %c0_98 = arith.constant 0 : index
    %c0_99 = arith.constant 0 : index
    %205 = vector.load %arg8[%c0_97, %c0_98, %c0_99] : memref<2x2x32xf32, #tpu.memory_space<vmem>>, vector<1x2x32xf32>
    %206 = vector.shape_cast %205 : vector<1x2x32xf32> to vector<2x32xf32>
    %207 = vector.shape_cast %199 : vector<2x32xf32> to vector<1x2x32xf32>
    tpu.vector_store %arg8[%c0_97, %c0_98, %c0_99], %207 {strides = array<i32>} : memref<2x2x32xf32, #tpu.memory_space<vmem>>, vector<1x2x32xf32>,
    %c1_100 = arith.constant 1 : index
    %c0_101 = arith.constant 0 : index
    %c0_102 = arith.constant 0 : index
    %208 = vector.load %arg7[%c1_100, %c0_101, %c0_102] : memref<2x2x32xf32, #tpu.memory_space<vmem>>, vector<1x2x32xf32>
    %209 = vector.shape_cast %208 : vector<1x2x32xf32> to vector<2x32xf32>
    %c1_103 = arith.constant 1 : index
    %c0_104 = arith.constant 0 : index
    %c0_105 = arith.constant 0 : index
    %210 = vector.load %arg8[%c1_103, %c0_104, %c0_105] : memref<2x2x32xf32, #tpu.memory_space<vmem>>, vector<1x2x32xf32>
    %211 = vector.shape_cast %210 : vector<1x2x32xf32> to vector<2x32xf32>
    %cst_106 = arith.constant dense<0.000000e+00> : vector<2x128xf32>
    %212 = tpu.matmul %201, %8, %cst_106 {dimension_numbers = #tpu.dot_dimension_numbers<[1], [0], [0], [1], [0, 0, 1, 1], [], []>} : vector<2x32xf32>, vector<32x128xf32>, vector<2x128xf32> -> vector<2x128xf32>
    %cst_107 = arith.constant dense<0.000000e+00> : vector<2x128xf32>
    %213 = tpu.matmul %209, %6, %cst_107 {dimension_numbers = #tpu.dot_dimension_numbers<[1], [0], [0], [1], [0, 0, 1, 1], [], []>} : vector<2x32xf32>, vector<32x128xf32>, vector<2x128xf32> -> vector<2x128xf32>
    %214 = arith.addf %212, %213 : vector<2x128xf32>
    %215 = vector.broadcast %10 : vector<1x128xf32> to vector<2x128xf32>
    %216 = arith.addf %214, %215 : vector<2x128xf32>
    %217 = vector.extract_strided_slice %216 {offsets = [0, 0], sizes = [2, 32], strides = [1, 1]} : vector<2x128xf32> to vector<2x32xf32>
    %218 = arith.negf %217 : vector<2x32xf32>
    %219 = math.exp %218 : vector<2x32xf32>
    %cst_108 = arith.constant 1.000000e+00 : f32
    %220 = vector.broadcast %cst_108 : f32 to vector<2x32xf32>
    %221 = arith.addf %220, %219 : vector<2x32xf32>
    %222 = arith.divf %220, %221 : vector<2x32xf32>
    %223 = vector.extract_strided_slice %216 {offsets = [0, 32], sizes = [2, 32], strides = [1, 1]} : vector<2x128xf32> to vector<2x32xf32>
    %224 = arith.negf %223 : vector<2x32xf32>
    %225 = math.exp %224 : vector<2x32xf32>
    %cst_109 = arith.constant 1.000000e+00 : f32
    %226 = vector.broadcast %cst_109 : f32 to vector<2x32xf32>
    %227 = arith.addf %226, %225 : vector<2x32xf32>
    %228 = arith.divf %226, %227 : vector<2x32xf32>
    %229 = vector.extract_strided_slice %216 {offsets = [0, 64], sizes = [2, 32], strides = [1, 1]} : vector<2x128xf32> to vector<2x32xf32>
    %230 = math.tanh %229 : vector<2x32xf32>
    %231 = vector.extract_strided_slice %216 {offsets = [0, 96], sizes = [2, 32], strides = [1, 1]} : vector<2x128xf32> to vector<2x32xf32>
    %232 = arith.negf %231 : vector<2x32xf32>
    %233 = math.exp %232 : vector<2x32xf32>
    %cst_110 = arith.constant 1.000000e+00 : f32
    %234 = vector.broadcast %cst_110 : f32 to vector<2x32xf32>
    %235 = arith.addf %234, %233 : vector<2x32xf32>
    %236 = arith.divf %234, %235 : vector<2x32xf32>
    %237 = arith.mulf %228, %211 : vector<2x32xf32>
    %238 = arith.mulf %222, %230 : vector<2x32xf32>
    %239 = arith.addf %237, %238 : vector<2x32xf32>
    %240 = math.tanh %239 : vector<2x32xf32>
    %241 = arith.mulf %236, %240 : vector<2x32xf32>
    %c1_111 = arith.constant 1 : index
    %c0_112 = arith.constant 0 : index
    %c0_113 = arith.constant 0 : index
    %242 = vector.load %arg7[%c1_111, %c0_112, %c0_113] : memref<2x2x32xf32, #tpu.memory_space<vmem>>, vector<1x2x32xf32>
    %243 = vector.shape_cast %242 : vector<1x2x32xf32> to vector<2x32xf32>
    %244 = vector.shape_cast %241 : vector<2x32xf32> to vector<1x2x32xf32>
    tpu.vector_store %arg7[%c1_111, %c0_112, %c0_113], %244 {strides = array<i32>} : memref<2x2x32xf32, #tpu.memory_space<vmem>>, vector<1x2x32xf32>,
    %c1_114 = arith.constant 1 : index
    %c0_115 = arith.constant 0 : index
    %c0_116 = arith.constant 0 : index
    %245 = vector.load %arg8[%c1_114, %c0_115, %c0_116] : memref<2x2x32xf32, #tpu.memory_space<vmem>>, vector<1x2x32xf32>
    %246 = vector.shape_cast %245 : vector<1x2x32xf32> to vector<2x32xf32>
    %247 = vector.shape_cast %239 : vector<2x32xf32> to vector<1x2x32xf32>
    tpu.vector_store %arg8[%c1_114, %c0_115, %c0_116], %247 {strides = array<i32>} : memref<2x2x32xf32, #tpu.memory_space<vmem>>, vector<1x2x32xf32>,
    %c0_117 = arith.constant 0 : index
    %c0_118 = arith.constant 0 : index
    %c0_119 = arith.constant 0 : index
    %248 = vector.load %arg7[%c0_117, %c0_118, %c0_119] : memref<2x2x32xf32, #tpu.memory_space<vmem>>, vector<1x2x32xf32>
    %249 = vector.shape_cast %248 : vector<1x2x32xf32> to vector<2x32xf32>
    %c0_120 = arith.constant 0 : index
    %c0_121 = arith.constant 0 : index
    %c0_122 = arith.constant 0 : index
    %250 = vector.load %arg8[%c0_120, %c0_121, %c0_122] : memref<2x2x32xf32, #tpu.memory_space<vmem>>, vector<1x2x32xf32>
    %251 = vector.shape_cast %250 : vector<1x2x32xf32> to vector<2x32xf32>
    %c3 = arith.constant 3 : index
    %c0_123 = arith.constant 0 : index
    %c0_124 = arith.constant 0 : index
    %252 = vector.load %arg1[%c3, %c0_123, %c0_124] : memref<8x2x128xf32, #tpu.memory_space<vmem>>, vector<1x2x128xf32>
    %253 = vector.shape_cast %252 : vector<1x2x128xf32> to vector<2x128xf32>
    %cst_125 = arith.constant dense<0.000000e+00> : vector<2x128xf32>
    %254 = tpu.matmul %249, %4, %cst_125 {dimension_numbers = #tpu.dot_dimension_numbers<[1], [0], [0], [1], [0, 0, 1, 1], [], []>} : vector<2x32xf32>, vector<32x128xf32>, vector<2x128xf32> -> vector<2x128xf32>
    %255 = arith.addf %253, %254 : vector<2x128xf32>
    %256 = vector.extract_strided_slice %255 {offsets = [0, 0], sizes = [2, 32], strides = [1, 1]} : vector<2x128xf32> to vector<2x32xf32>
    %257 = arith.negf %256 : vector<2x32xf32>
    %258 = math.exp %257 : vector<2x32xf32>
    %cst_126 = arith.constant 1.000000e+00 : f32
    %259 = vector.broadcast %cst_126 : f32 to vector<2x32xf32>
    %260 = arith.addf %259, %258 : vector<2x32xf32>
    %261 = arith.divf %259, %260 : vector<2x32xf32>
    %262 = vector.extract_strided_slice %255 {offsets = [0, 32], sizes = [2, 32], strides = [1, 1]} : vector<2x128xf32> to vector<2x32xf32>
    %263 = arith.negf %262 : vector<2x32xf32>
    %264 = math.exp %263 : vector<2x32xf32>
    %cst_127 = arith.constant 1.000000e+00 : f32
    %265 = vector.broadcast %cst_127 : f32 to vector<2x32xf32>
    %266 = arith.addf %265, %264 : vector<2x32xf32>
    %267 = arith.divf %265, %266 : vector<2x32xf32>
    %268 = vector.extract_strided_slice %255 {offsets = [0, 64], sizes = [2, 32], strides = [1, 1]} : vector<2x128xf32> to vector<2x32xf32>
    %269 = math.tanh %268 : vector<2x32xf32>
    %270 = vector.extract_strided_slice %255 {offsets = [0, 96], sizes = [2, 32], strides = [1, 1]} : vector<2x128xf32> to vector<2x32xf32>
    %271 = arith.negf %270 : vector<2x32xf32>
    %272 = math.exp %271 : vector<2x32xf32>
    %cst_128 = arith.constant 1.000000e+00 : f32
    %273 = vector.broadcast %cst_128 : f32 to vector<2x32xf32>
    %274 = arith.addf %273, %272 : vector<2x32xf32>
    %275 = arith.divf %273, %274 : vector<2x32xf32>
    %276 = arith.mulf %267, %251 : vector<2x32xf32>
    %277 = arith.mulf %261, %269 : vector<2x32xf32>
    %278 = arith.addf %276, %277 : vector<2x32xf32>
    %279 = math.tanh %278 : vector<2x32xf32>
    %280 = arith.mulf %275, %279 : vector<2x32xf32>
    %c0_129 = arith.constant 0 : index
    %c0_130 = arith.constant 0 : index
    %c0_131 = arith.constant 0 : index
    %281 = vector.load %arg7[%c0_129, %c0_130, %c0_131] : memref<2x2x32xf32, #tpu.memory_space<vmem>>, vector<1x2x32xf32>
    %282 = vector.shape_cast %281 : vector<1x2x32xf32> to vector<2x32xf32>
    %283 = vector.shape_cast %280 : vector<2x32xf32> to vector<1x2x32xf32>
    tpu.vector_store %arg7[%c0_129, %c0_130, %c0_131], %283 {strides = array<i32>} : memref<2x2x32xf32, #tpu.memory_space<vmem>>, vector<1x2x32xf32>,
    %c0_132 = arith.constant 0 : index
    %c0_133 = arith.constant 0 : index
    %c0_134 = arith.constant 0 : index
    %284 = vector.load %arg8[%c0_132, %c0_133, %c0_134] : memref<2x2x32xf32, #tpu.memory_space<vmem>>, vector<1x2x32xf32>
    %285 = vector.shape_cast %284 : vector<1x2x32xf32> to vector<2x32xf32>
    %286 = vector.shape_cast %278 : vector<2x32xf32> to vector<1x2x32xf32>
    tpu.vector_store %arg8[%c0_132, %c0_133, %c0_134], %286 {strides = array<i32>} : memref<2x2x32xf32, #tpu.memory_space<vmem>>, vector<1x2x32xf32>,
    %c1_135 = arith.constant 1 : index
    %c0_136 = arith.constant 0 : index
    %c0_137 = arith.constant 0 : index
    %287 = vector.load %arg7[%c1_135, %c0_136, %c0_137] : memref<2x2x32xf32, #tpu.memory_space<vmem>>, vector<1x2x32xf32>
    %288 = vector.shape_cast %287 : vector<1x2x32xf32> to vector<2x32xf32>
    %c1_138 = arith.constant 1 : index
    %c0_139 = arith.constant 0 : index
    %c0_140 = arith.constant 0 : index
    %289 = vector.load %arg8[%c1_138, %c0_139, %c0_140] : memref<2x2x32xf32, #tpu.memory_space<vmem>>, vector<1x2x32xf32>
    %290 = vector.shape_cast %289 : vector<1x2x32xf32> to vector<2x32xf32>
    %cst_141 = arith.constant dense<0.000000e+00> : vector<2x128xf32>
    %291 = tpu.matmul %280, %8, %cst_141 {dimension_numbers = #tpu.dot_dimension_numbers<[1], [0], [0], [1], [0, 0, 1, 1], [], []>} : vector<2x32xf32>, vector<32x128xf32>, vector<2x128xf32> -> vector<2x128xf32>
    %cst_142 = arith.constant dense<0.000000e+00> : vector<2x128xf32>
    %292 = tpu.matmul %288, %6, %cst_142 {dimension_numbers = #tpu.dot_dimension_numbers<[1], [0], [0], [1], [0, 0, 1, 1], [], []>} : vector<2x32xf32>, vector<32x128xf32>, vector<2x128xf32> -> vector<2x128xf32>
    %293 = arith.addf %291, %292 : vector<2x128xf32>
    %294 = vector.broadcast %10 : vector<1x128xf32> to vector<2x128xf32>
    %295 = arith.addf %293, %294 : vector<2x128xf32>
    %296 = vector.extract_strided_slice %295 {offsets = [0, 0], sizes = [2, 32], strides = [1, 1]} : vector<2x128xf32> to vector<2x32xf32>
    %297 = arith.negf %296 : vector<2x32xf32>
    %298 = math.exp %297 : vector<2x32xf32>
    %cst_143 = arith.constant 1.000000e+00 : f32
    %299 = vector.broadcast %cst_143 : f32 to vector<2x32xf32>
    %300 = arith.addf %299, %298 : vector<2x32xf32>
    %301 = arith.divf %299, %300 : vector<2x32xf32>
    %302 = vector.extract_strided_slice %295 {offsets = [0, 32], sizes = [2, 32], strides = [1, 1]} : vector<2x128xf32> to vector<2x32xf32>
    %303 = arith.negf %302 : vector<2x32xf32>
    %304 = math.exp %303 : vector<2x32xf32>
    %cst_144 = arith.constant 1.000000e+00 : f32
    %305 = vector.broadcast %cst_144 : f32 to vector<2x32xf32>
    %306 = arith.addf %305, %304 : vector<2x32xf32>
    %307 = arith.divf %305, %306 : vector<2x32xf32>
    %308 = vector.extract_strided_slice %295 {offsets = [0, 64], sizes = [2, 32], strides = [1, 1]} : vector<2x128xf32> to vector<2x32xf32>
    %309 = math.tanh %308 : vector<2x32xf32>
    %310 = vector.extract_strided_slice %295 {offsets = [0, 96], sizes = [2, 32], strides = [1, 1]} : vector<2x128xf32> to vector<2x32xf32>
    %311 = arith.negf %310 : vector<2x32xf32>
    %312 = math.exp %311 : vector<2x32xf32>
    %cst_145 = arith.constant 1.000000e+00 : f32
    %313 = vector.broadcast %cst_145 : f32 to vector<2x32xf32>
    %314 = arith.addf %313, %312 : vector<2x32xf32>
    %315 = arith.divf %313, %314 : vector<2x32xf32>
    %316 = arith.mulf %307, %290 : vector<2x32xf32>
    %317 = arith.mulf %301, %309 : vector<2x32xf32>
    %318 = arith.addf %316, %317 : vector<2x32xf32>
    %319 = math.tanh %318 : vector<2x32xf32>
    %320 = arith.mulf %315, %319 : vector<2x32xf32>
    %c1_146 = arith.constant 1 : index
    %c0_147 = arith.constant 0 : index
    %c0_148 = arith.constant 0 : index
    %321 = vector.load %arg7[%c1_146, %c0_147, %c0_148] : memref<2x2x32xf32, #tpu.memory_space<vmem>>, vector<1x2x32xf32>
    %322 = vector.shape_cast %321 : vector<1x2x32xf32> to vector<2x32xf32>
    %323 = vector.shape_cast %320 : vector<2x32xf32> to vector<1x2x32xf32>
    tpu.vector_store %arg7[%c1_146, %c0_147, %c0_148], %323 {strides = array<i32>} : memref<2x2x32xf32, #tpu.memory_space<vmem>>, vector<1x2x32xf32>,
    %c1_149 = arith.constant 1 : index
    %c0_150 = arith.constant 0 : index
    %c0_151 = arith.constant 0 : index
    %324 = vector.load %arg8[%c1_149, %c0_150, %c0_151] : memref<2x2x32xf32, #tpu.memory_space<vmem>>, vector<1x2x32xf32>
    %325 = vector.shape_cast %324 : vector<1x2x32xf32> to vector<2x32xf32>
    %326 = vector.shape_cast %318 : vector<2x32xf32> to vector<1x2x32xf32>
    tpu.vector_store %arg8[%c1_149, %c0_150, %c0_151], %326 {strides = array<i32>} : memref<2x2x32xf32, #tpu.memory_space<vmem>>, vector<1x2x32xf32>,
    %c0_152 = arith.constant 0 : index
    %c0_153 = arith.constant 0 : index
    %c0_154 = arith.constant 0 : index
    %327 = vector.load %arg7[%c0_152, %c0_153, %c0_154] : memref<2x2x32xf32, #tpu.memory_space<vmem>>, vector<1x2x32xf32>
    %328 = vector.shape_cast %327 : vector<1x2x32xf32> to vector<2x32xf32>
    %c0_155 = arith.constant 0 : index
    %c0_156 = arith.constant 0 : index
    %c0_157 = arith.constant 0 : index
    %329 = vector.load %arg8[%c0_155, %c0_156, %c0_157] : memref<2x2x32xf32, #tpu.memory_space<vmem>>, vector<1x2x32xf32>
    %330 = vector.shape_cast %329 : vector<1x2x32xf32> to vector<2x32xf32>
    %c4 = arith.constant 4 : index
    %c0_158 = arith.constant 0 : index
    %c0_159 = arith.constant 0 : index
    %331 = vector.load %arg1[%c4, %c0_158, %c0_159] : memref<8x2x128xf32, #tpu.memory_space<vmem>>, vector<1x2x128xf32>
    %332 = vector.shape_cast %331 : vector<1x2x128xf32> to vector<2x128xf32>
    %cst_160 = arith.constant dense<0.000000e+00> : vector<2x128xf32>
    %333 = tpu.matmul %328, %4, %cst_160 {dimension_numbers = #tpu.dot_dimension_numbers<[1], [0], [0], [1], [0, 0, 1, 1], [], []>} : vector<2x32xf32>, vector<32x128xf32>, vector<2x128xf32> -> vector<2x128xf32>
    %334 = arith.addf %332, %333 : vector<2x128xf32>
    %335 = vector.extract_strided_slice %334 {offsets = [0, 0], sizes = [2, 32], strides = [1, 1]} : vector<2x128xf32> to vector<2x32xf32>
    %336 = arith.negf %335 : vector<2x32xf32>
    %337 = math.exp %336 : vector<2x32xf32>
    %cst_161 = arith.constant 1.000000e+00 : f32
    %338 = vector.broadcast %cst_161 : f32 to vector<2x32xf32>
    %339 = arith.addf %338, %337 : vector<2x32xf32>
    %340 = arith.divf %338, %339 : vector<2x32xf32>
    %341 = vector.extract_strided_slice %334 {offsets = [0, 32], sizes = [2, 32], strides = [1, 1]} : vector<2x128xf32> to vector<2x32xf32>
    %342 = arith.negf %341 : vector<2x32xf32>
    %343 = math.exp %342 : vector<2x32xf32>
    %cst_162 = arith.constant 1.000000e+00 : f32
    %344 = vector.broadcast %cst_162 : f32 to vector<2x32xf32>
    %345 = arith.addf %344, %343 : vector<2x32xf32>
    %346 = arith.divf %344, %345 : vector<2x32xf32>
    %347 = vector.extract_strided_slice %334 {offsets = [0, 64], sizes = [2, 32], strides = [1, 1]} : vector<2x128xf32> to vector<2x32xf32>
    %348 = math.tanh %347 : vector<2x32xf32>
    %349 = vector.extract_strided_slice %334 {offsets = [0, 96], sizes = [2, 32], strides = [1, 1]} : vector<2x128xf32> to vector<2x32xf32>
    %350 = arith.negf %349 : vector<2x32xf32>
    %351 = math.exp %350 : vector<2x32xf32>
    %cst_163 = arith.constant 1.000000e+00 : f32
    %352 = vector.broadcast %cst_163 : f32 to vector<2x32xf32>
    %353 = arith.addf %352, %351 : vector<2x32xf32>
    %354 = arith.divf %352, %353 : vector<2x32xf32>
    %355 = arith.mulf %346, %330 : vector<2x32xf32>
    %356 = arith.mulf %340, %348 : vector<2x32xf32>
    %357 = arith.addf %355, %356 : vector<2x32xf32>
    %358 = math.tanh %357 : vector<2x32xf32>
    %359 = arith.mulf %354, %358 : vector<2x32xf32>
    %c0_164 = arith.constant 0 : index
    %c0_165 = arith.constant 0 : index
    %c0_166 = arith.constant 0 : index
    %360 = vector.load %arg7[%c0_164, %c0_165, %c0_166] : memref<2x2x32xf32, #tpu.memory_space<vmem>>, vector<1x2x32xf32>
    %361 = vector.shape_cast %360 : vector<1x2x32xf32> to vector<2x32xf32>
    %362 = vector.shape_cast %359 : vector<2x32xf32> to vector<1x2x32xf32>
    tpu.vector_store %arg7[%c0_164, %c0_165, %c0_166], %362 {strides = array<i32>} : memref<2x2x32xf32, #tpu.memory_space<vmem>>, vector<1x2x32xf32>,
    %c0_167 = arith.constant 0 : index
    %c0_168 = arith.constant 0 : index
    %c0_169 = arith.constant 0 : index
    %363 = vector.load %arg8[%c0_167, %c0_168, %c0_169] : memref<2x2x32xf32, #tpu.memory_space<vmem>>, vector<1x2x32xf32>
    %364 = vector.shape_cast %363 : vector<1x2x32xf32> to vector<2x32xf32>
    %365 = vector.shape_cast %357 : vector<2x32xf32> to vector<1x2x32xf32>
    tpu.vector_store %arg8[%c0_167, %c0_168, %c0_169], %365 {strides = array<i32>} : memref<2x2x32xf32, #tpu.memory_space<vmem>>, vector<1x2x32xf32>,
    %c1_170 = arith.constant 1 : index
    %c0_171 = arith.constant 0 : index
    %c0_172 = arith.constant 0 : index
    %366 = vector.load %arg7[%c1_170, %c0_171, %c0_172] : memref<2x2x32xf32, #tpu.memory_space<vmem>>, vector<1x2x32xf32>
    %367 = vector.shape_cast %366 : vector<1x2x32xf32> to vector<2x32xf32>
    %c1_173 = arith.constant 1 : index
    %c0_174 = arith.constant 0 : index
    %c0_175 = arith.constant 0 : index
    %368 = vector.load %arg8[%c1_173, %c0_174, %c0_175] : memref<2x2x32xf32, #tpu.memory_space<vmem>>, vector<1x2x32xf32>
    %369 = vector.shape_cast %368 : vector<1x2x32xf32> to vector<2x32xf32>
    %cst_176 = arith.constant dense<0.000000e+00> : vector<2x128xf32>
    %370 = tpu.matmul %359, %8, %cst_176 {dimension_numbers = #tpu.dot_dimension_numbers<[1], [0], [0], [1], [0, 0, 1, 1], [], []>} : vector<2x32xf32>, vector<32x128xf32>, vector<2x128xf32> -> vector<2x128xf32>
    %cst_177 = arith.constant dense<0.000000e+00> : vector<2x128xf32>
    %371 = tpu.matmul %367, %6, %cst_177 {dimension_numbers = #tpu.dot_dimension_numbers<[1], [0], [0], [1], [0, 0, 1, 1], [], []>} : vector<2x32xf32>, vector<32x128xf32>, vector<2x128xf32> -> vector<2x128xf32>
    %372 = arith.addf %370, %371 : vector<2x128xf32>
    %373 = vector.broadcast %10 : vector<1x128xf32> to vector<2x128xf32>
    %374 = arith.addf %372, %373 : vector<2x128xf32>
    %375 = vector.extract_strided_slice %374 {offsets = [0, 0], sizes = [2, 32], strides = [1, 1]} : vector<2x128xf32> to vector<2x32xf32>
    %376 = arith.negf %375 : vector<2x32xf32>
    %377 = math.exp %376 : vector<2x32xf32>
    %cst_178 = arith.constant 1.000000e+00 : f32
    %378 = vector.broadcast %cst_178 : f32 to vector<2x32xf32>
    %379 = arith.addf %378, %377 : vector<2x32xf32>
    %380 = arith.divf %378, %379 : vector<2x32xf32>
    %381 = vector.extract_strided_slice %374 {offsets = [0, 32], sizes = [2, 32], strides = [1, 1]} : vector<2x128xf32> to vector<2x32xf32>
    %382 = arith.negf %381 : vector<2x32xf32>
    %383 = math.exp %382 : vector<2x32xf32>
    %cst_179 = arith.constant 1.000000e+00 : f32
    %384 = vector.broadcast %cst_179 : f32 to vector<2x32xf32>
    %385 = arith.addf %384, %383 : vector<2x32xf32>
    %386 = arith.divf %384, %385 : vector<2x32xf32>
    %387 = vector.extract_strided_slice %374 {offsets = [0, 64], sizes = [2, 32], strides = [1, 1]} : vector<2x128xf32> to vector<2x32xf32>
    %388 = math.tanh %387 : vector<2x32xf32>
    %389 = vector.extract_strided_slice %374 {offsets = [0, 96], sizes = [2, 32], strides = [1, 1]} : vector<2x128xf32> to vector<2x32xf32>
    %390 = arith.negf %389 : vector<2x32xf32>
    %391 = math.exp %390 : vector<2x32xf32>
    %cst_180 = arith.constant 1.000000e+00 : f32
    %392 = vector.broadcast %cst_180 : f32 to vector<2x32xf32>
    %393 = arith.addf %392, %391 : vector<2x32xf32>
    %394 = arith.divf %392, %393 : vector<2x32xf32>
    %395 = arith.mulf %386, %369 : vector<2x32xf32>
    %396 = arith.mulf %380, %388 : vector<2x32xf32>
    %397 = arith.addf %395, %396 : vector<2x32xf32>
    %398 = math.tanh %397 : vector<2x32xf32>
    %399 = arith.mulf %394, %398 : vector<2x32xf32>
    %c1_181 = arith.constant 1 : index
    %c0_182 = arith.constant 0 : index
    %c0_183 = arith.constant 0 : index
    %400 = vector.load %arg7[%c1_181, %c0_182, %c0_183] : memref<2x2x32xf32, #tpu.memory_space<vmem>>, vector<1x2x32xf32>
    %401 = vector.shape_cast %400 : vector<1x2x32xf32> to vector<2x32xf32>
    %402 = vector.shape_cast %399 : vector<2x32xf32> to vector<1x2x32xf32>
    tpu.vector_store %arg7[%c1_181, %c0_182, %c0_183], %402 {strides = array<i32>} : memref<2x2x32xf32, #tpu.memory_space<vmem>>, vector<1x2x32xf32>,
    %c1_184 = arith.constant 1 : index
    %c0_185 = arith.constant 0 : index
    %c0_186 = arith.constant 0 : index
    %403 = vector.load %arg8[%c1_184, %c0_185, %c0_186] : memref<2x2x32xf32, #tpu.memory_space<vmem>>, vector<1x2x32xf32>
    %404 = vector.shape_cast %403 : vector<1x2x32xf32> to vector<2x32xf32>
    %405 = vector.shape_cast %397 : vector<2x32xf32> to vector<1x2x32xf32>
    tpu.vector_store %arg8[%c1_184, %c0_185, %c0_186], %405 {strides = array<i32>} : memref<2x2x32xf32, #tpu.memory_space<vmem>>, vector<1x2x32xf32>,
    %c0_187 = arith.constant 0 : index
    %c0_188 = arith.constant 0 : index
    %c0_189 = arith.constant 0 : index
    %406 = vector.load %arg7[%c0_187, %c0_188, %c0_189] : memref<2x2x32xf32, #tpu.memory_space<vmem>>, vector<1x2x32xf32>
    %407 = vector.shape_cast %406 : vector<1x2x32xf32> to vector<2x32xf32>
    %c0_190 = arith.constant 0 : index
    %c0_191 = arith.constant 0 : index
    %c0_192 = arith.constant 0 : index
    %408 = vector.load %arg8[%c0_190, %c0_191, %c0_192] : memref<2x2x32xf32, #tpu.memory_space<vmem>>, vector<1x2x32xf32>
    %409 = vector.shape_cast %408 : vector<1x2x32xf32> to vector<2x32xf32>
    %c5 = arith.constant 5 : index
    %c0_193 = arith.constant 0 : index
    %c0_194 = arith.constant 0 : index
    %410 = vector.load %arg1[%c5, %c0_193, %c0_194] : memref<8x2x128xf32, #tpu.memory_space<vmem>>, vector<1x2x128xf32>
    %411 = vector.shape_cast %410 : vector<1x2x128xf32> to vector<2x128xf32>
    %cst_195 = arith.constant dense<0.000000e+00> : vector<2x128xf32>
    %412 = tpu.matmul %407, %4, %cst_195 {dimension_numbers = #tpu.dot_dimension_numbers<[1], [0], [0], [1], [0, 0, 1, 1], [], []>} : vector<2x32xf32>, vector<32x128xf32>, vector<2x128xf32> -> vector<2x128xf32>
    %413 = arith.addf %411, %412 : vector<2x128xf32>
    %414 = vector.extract_strided_slice %413 {offsets = [0, 0], sizes = [2, 32], strides = [1, 1]} : vector<2x128xf32> to vector<2x32xf32>
    %415 = arith.negf %414 : vector<2x32xf32>
    %416 = math.exp %415 : vector<2x32xf32>
    %cst_196 = arith.constant 1.000000e+00 : f32
    %417 = vector.broadcast %cst_196 : f32 to vector<2x32xf32>
    %418 = arith.addf %417, %416 : vector<2x32xf32>
    %419 = arith.divf %417, %418 : vector<2x32xf32>
    %420 = vector.extract_strided_slice %413 {offsets = [0, 32], sizes = [2, 32], strides = [1, 1]} : vector<2x128xf32> to vector<2x32xf32>
    %421 = arith.negf %420 : vector<2x32xf32>
    %422 = math.exp %421 : vector<2x32xf32>
    %cst_197 = arith.constant 1.000000e+00 : f32
    %423 = vector.broadcast %cst_197 : f32 to vector<2x32xf32>
    %424 = arith.addf %423, %422 : vector<2x32xf32>
    %425 = arith.divf %423, %424 : vector<2x32xf32>
    %426 = vector.extract_strided_slice %413 {offsets = [0, 64], sizes = [2, 32], strides = [1, 1]} : vector<2x128xf32> to vector<2x32xf32>
    %427 = math.tanh %426 : vector<2x32xf32>
    %428 = vector.extract_strided_slice %413 {offsets = [0, 96], sizes = [2, 32], strides = [1, 1]} : vector<2x128xf32> to vector<2x32xf32>
    %429 = arith.negf %428 : vector<2x32xf32>
    %430 = math.exp %429 : vector<2x32xf32>
    %cst_198 = arith.constant 1.000000e+00 : f32
    %431 = vector.broadcast %cst_198 : f32 to vector<2x32xf32>
    %432 = arith.addf %431, %430 : vector<2x32xf32>
    %433 = arith.divf %431, %432 : vector<2x32xf32>
    %434 = arith.mulf %425, %409 : vector<2x32xf32>
    %435 = arith.mulf %419, %427 : vector<2x32xf32>
    %436 = arith.addf %434, %435 : vector<2x32xf32>
    %437 = math.tanh %436 : vector<2x32xf32>
    %438 = arith.mulf %433, %437 : vector<2x32xf32>
    %c0_199 = arith.constant 0 : index
    %c0_200 = arith.constant 0 : index
    %c0_201 = arith.constant 0 : index
    %439 = vector.load %arg7[%c0_199, %c0_200, %c0_201] : memref<2x2x32xf32, #tpu.memory_space<vmem>>, vector<1x2x32xf32>
    %440 = vector.shape_cast %439 : vector<1x2x32xf32> to vector<2x32xf32>
    %441 = vector.shape_cast %438 : vector<2x32xf32> to vector<1x2x32xf32>
    tpu.vector_store %arg7[%c0_199, %c0_200, %c0_201], %441 {strides = array<i32>} : memref<2x2x32xf32, #tpu.memory_space<vmem>>, vector<1x2x32xf32>,
    %c0_202 = arith.constant 0 : index
    %c0_203 = arith.constant 0 : index
    %c0_204 = arith.constant 0 : index
    %442 = vector.load %arg8[%c0_202, %c0_203, %c0_204] : memref<2x2x32xf32, #tpu.memory_space<vmem>>, vector<1x2x32xf32>
    %443 = vector.shape_cast %442 : vector<1x2x32xf32> to vector<2x32xf32>
    %444 = vector.shape_cast %436 : vector<2x32xf32> to vector<1x2x32xf32>
    tpu.vector_store %arg8[%c0_202, %c0_203, %c0_204], %444 {strides = array<i32>} : memref<2x2x32xf32, #tpu.memory_space<vmem>>, vector<1x2x32xf32>,
    %c1_205 = arith.constant 1 : index
    %c0_206 = arith.constant 0 : index
    %c0_207 = arith.constant 0 : index
    %445 = vector.load %arg7[%c1_205, %c0_206, %c0_207] : memref<2x2x32xf32, #tpu.memory_space<vmem>>, vector<1x2x32xf32>
    %446 = vector.shape_cast %445 : vector<1x2x32xf32> to vector<2x32xf32>
    %c1_208 = arith.constant 1 : index
    %c0_209 = arith.constant 0 : index
    %c0_210 = arith.constant 0 : index
    %447 = vector.load %arg8[%c1_208, %c0_209, %c0_210] : memref<2x2x32xf32, #tpu.memory_space<vmem>>, vector<1x2x32xf32>
    %448 = vector.shape_cast %447 : vector<1x2x32xf32> to vector<2x32xf32>
    %cst_211 = arith.constant dense<0.000000e+00> : vector<2x128xf32>
    %449 = tpu.matmul %438, %8, %cst_211 {dimension_numbers = #tpu.dot_dimension_numbers<[1], [0], [0], [1], [0, 0, 1, 1], [], []>} : vector<2x32xf32>, vector<32x128xf32>, vector<2x128xf32> -> vector<2x128xf32>
    %cst_212 = arith.constant dense<0.000000e+00> : vector<2x128xf32>
    %450 = tpu.matmul %446, %6, %cst_212 {dimension_numbers = #tpu.dot_dimension_numbers<[1], [0], [0], [1], [0, 0, 1, 1], [], []>} : vector<2x32xf32>, vector<32x128xf32>, vector<2x128xf32> -> vector<2x128xf32>
    %451 = arith.addf %449, %450 : vector<2x128xf32>
    %452 = vector.broadcast %10 : vector<1x128xf32> to vector<2x128xf32>
    %453 = arith.addf %451, %452 : vector<2x128xf32>
    %454 = vector.extract_strided_slice %453 {offsets = [0, 0], sizes = [2, 32], strides = [1, 1]} : vector<2x128xf32> to vector<2x32xf32>
    %455 = arith.negf %454 : vector<2x32xf32>
    %456 = math.exp %455 : vector<2x32xf32>
    %cst_213 = arith.constant 1.000000e+00 : f32
    %457 = vector.broadcast %cst_213 : f32 to vector<2x32xf32>
    %458 = arith.addf %457, %456 : vector<2x32xf32>
    %459 = arith.divf %457, %458 : vector<2x32xf32>
    %460 = vector.extract_strided_slice %453 {offsets = [0, 32], sizes = [2, 32], strides = [1, 1]} : vector<2x128xf32> to vector<2x32xf32>
    %461 = arith.negf %460 : vector<2x32xf32>
    %462 = math.exp %461 : vector<2x32xf32>
    %cst_214 = arith.constant 1.000000e+00 : f32
    %463 = vector.broadcast %cst_214 : f32 to vector<2x32xf32>
    %464 = arith.addf %463, %462 : vector<2x32xf32>
    %465 = arith.divf %463, %464 : vector<2x32xf32>
    %466 = vector.extract_strided_slice %453 {offsets = [0, 64], sizes = [2, 32], strides = [1, 1]} : vector<2x128xf32> to vector<2x32xf32>
    %467 = math.tanh %466 : vector<2x32xf32>
    %468 = vector.extract_strided_slice %453 {offsets = [0, 96], sizes = [2, 32], strides = [1, 1]} : vector<2x128xf32> to vector<2x32xf32>
    %469 = arith.negf %468 : vector<2x32xf32>
    %470 = math.exp %469 : vector<2x32xf32>
    %cst_215 = arith.constant 1.000000e+00 : f32
    %471 = vector.broadcast %cst_215 : f32 to vector<2x32xf32>
    %472 = arith.addf %471, %470 : vector<2x32xf32>
    %473 = arith.divf %471, %472 : vector<2x32xf32>
    %474 = arith.mulf %465, %448 : vector<2x32xf32>
    %475 = arith.mulf %459, %467 : vector<2x32xf32>
    %476 = arith.addf %474, %475 : vector<2x32xf32>
    %477 = math.tanh %476 : vector<2x32xf32>
    %478 = arith.mulf %473, %477 : vector<2x32xf32>
    %c1_216 = arith.constant 1 : index
    %c0_217 = arith.constant 0 : index
    %c0_218 = arith.constant 0 : index
    %479 = vector.load %arg7[%c1_216, %c0_217, %c0_218] : memref<2x2x32xf32, #tpu.memory_space<vmem>>, vector<1x2x32xf32>
    %480 = vector.shape_cast %479 : vector<1x2x32xf32> to vector<2x32xf32>
    %481 = vector.shape_cast %478 : vector<2x32xf32> to vector<1x2x32xf32>
    tpu.vector_store %arg7[%c1_216, %c0_217, %c0_218], %481 {strides = array<i32>} : memref<2x2x32xf32, #tpu.memory_space<vmem>>, vector<1x2x32xf32>,
    %c1_219 = arith.constant 1 : index
    %c0_220 = arith.constant 0 : index
    %c0_221 = arith.constant 0 : index
    %482 = vector.load %arg8[%c1_219, %c0_220, %c0_221] : memref<2x2x32xf32, #tpu.memory_space<vmem>>, vector<1x2x32xf32>
    %483 = vector.shape_cast %482 : vector<1x2x32xf32> to vector<2x32xf32>
    %484 = vector.shape_cast %476 : vector<2x32xf32> to vector<1x2x32xf32>
    tpu.vector_store %arg8[%c1_219, %c0_220, %c0_221], %484 {strides = array<i32>} : memref<2x2x32xf32, #tpu.memory_space<vmem>>, vector<1x2x32xf32>,
    %c0_222 = arith.constant 0 : index
    %c0_223 = arith.constant 0 : index
    %c0_224 = arith.constant 0 : index
    %485 = vector.load %arg7[%c0_222, %c0_223, %c0_224] : memref<2x2x32xf32, #tpu.memory_space<vmem>>, vector<1x2x32xf32>
    %486 = vector.shape_cast %485 : vector<1x2x32xf32> to vector<2x32xf32>
    %c0_225 = arith.constant 0 : index
    %c0_226 = arith.constant 0 : index
    %c0_227 = arith.constant 0 : index
    %487 = vector.load %arg8[%c0_225, %c0_226, %c0_227] : memref<2x2x32xf32, #tpu.memory_space<vmem>>, vector<1x2x32xf32>
    %488 = vector.shape_cast %487 : vector<1x2x32xf32> to vector<2x32xf32>
    %c6 = arith.constant 6 : index
    %c0_228 = arith.constant 0 : index
    %c0_229 = arith.constant 0 : index
    %489 = vector.load %arg1[%c6, %c0_228, %c0_229] : memref<8x2x128xf32, #tpu.memory_space<vmem>>, vector<1x2x128xf32>
    %490 = vector.shape_cast %489 : vector<1x2x128xf32> to vector<2x128xf32>
    %cst_230 = arith.constant dense<0.000000e+00> : vector<2x128xf32>
    %491 = tpu.matmul %486, %4, %cst_230 {dimension_numbers = #tpu.dot_dimension_numbers<[1], [0], [0], [1], [0, 0, 1, 1], [], []>} : vector<2x32xf32>, vector<32x128xf32>, vector<2x128xf32> -> vector<2x128xf32>
    %492 = arith.addf %490, %491 : vector<2x128xf32>
    %493 = vector.extract_strided_slice %492 {offsets = [0, 0], sizes = [2, 32], strides = [1, 1]} : vector<2x128xf32> to vector<2x32xf32>
    %494 = arith.negf %493 : vector<2x32xf32>
    %495 = math.exp %494 : vector<2x32xf32>
    %cst_231 = arith.constant 1.000000e+00 : f32
    %496 = vector.broadcast %cst_231 : f32 to vector<2x32xf32>
    %497 = arith.addf %496, %495 : vector<2x32xf32>
    %498 = arith.divf %496, %497 : vector<2x32xf32>
    %499 = vector.extract_strided_slice %492 {offsets = [0, 32], sizes = [2, 32], strides = [1, 1]} : vector<2x128xf32> to vector<2x32xf32>
    %500 = arith.negf %499 : vector<2x32xf32>
    %501 = math.exp %500 : vector<2x32xf32>
    %cst_232 = arith.constant 1.000000e+00 : f32
    %502 = vector.broadcast %cst_232 : f32 to vector<2x32xf32>
    %503 = arith.addf %502, %501 : vector<2x32xf32>
    %504 = arith.divf %502, %503 : vector<2x32xf32>
    %505 = vector.extract_strided_slice %492 {offsets = [0, 64], sizes = [2, 32], strides = [1, 1]} : vector<2x128xf32> to vector<2x32xf32>
    %506 = math.tanh %505 : vector<2x32xf32>
    %507 = vector.extract_strided_slice %492 {offsets = [0, 96], sizes = [2, 32], strides = [1, 1]} : vector<2x128xf32> to vector<2x32xf32>
    %508 = arith.negf %507 : vector<2x32xf32>
    %509 = math.exp %508 : vector<2x32xf32>
    %cst_233 = arith.constant 1.000000e+00 : f32
    %510 = vector.broadcast %cst_233 : f32 to vector<2x32xf32>
    %511 = arith.addf %510, %509 : vector<2x32xf32>
    %512 = arith.divf %510, %511 : vector<2x32xf32>
    %513 = arith.mulf %504, %488 : vector<2x32xf32>
    %514 = arith.mulf %498, %506 : vector<2x32xf32>
    %515 = arith.addf %513, %514 : vector<2x32xf32>
    %516 = math.tanh %515 : vector<2x32xf32>
    %517 = arith.mulf %512, %516 : vector<2x32xf32>
    %c0_234 = arith.constant 0 : index
    %c0_235 = arith.constant 0 : index
    %c0_236 = arith.constant 0 : index
    %518 = vector.load %arg7[%c0_234, %c0_235, %c0_236] : memref<2x2x32xf32, #tpu.memory_space<vmem>>, vector<1x2x32xf32>
    %519 = vector.shape_cast %518 : vector<1x2x32xf32> to vector<2x32xf32>
    %520 = vector.shape_cast %517 : vector<2x32xf32> to vector<1x2x32xf32>
    tpu.vector_store %arg7[%c0_234, %c0_235, %c0_236], %520 {strides = array<i32>} : memref<2x2x32xf32, #tpu.memory_space<vmem>>, vector<1x2x32xf32>,
    %c0_237 = arith.constant 0 : index
    %c0_238 = arith.constant 0 : index
    %c0_239 = arith.constant 0 : index
    %521 = vector.load %arg8[%c0_237, %c0_238, %c0_239] : memref<2x2x32xf32, #tpu.memory_space<vmem>>, vector<1x2x32xf32>
    %522 = vector.shape_cast %521 : vector<1x2x32xf32> to vector<2x32xf32>
    %523 = vector.shape_cast %515 : vector<2x32xf32> to vector<1x2x32xf32>
    tpu.vector_store %arg8[%c0_237, %c0_238, %c0_239], %523 {strides = array<i32>} : memref<2x2x32xf32, #tpu.memory_space<vmem>>, vector<1x2x32xf32>,
    %c1_240 = arith.constant 1 : index
    %c0_241 = arith.constant 0 : index
    %c0_242 = arith.constant 0 : index
    %524 = vector.load %arg7[%c1_240, %c0_241, %c0_242] : memref<2x2x32xf32, #tpu.memory_space<vmem>>, vector<1x2x32xf32>
    %525 = vector.shape_cast %524 : vector<1x2x32xf32> to vector<2x32xf32>
    %c1_243 = arith.constant 1 : index
    %c0_244 = arith.constant 0 : index
    %c0_245 = arith.constant 0 : index
    %526 = vector.load %arg8[%c1_243, %c0_244, %c0_245] : memref<2x2x32xf32, #tpu.memory_space<vmem>>, vector<1x2x32xf32>
    %527 = vector.shape_cast %526 : vector<1x2x32xf32> to vector<2x32xf32>
    %cst_246 = arith.constant dense<0.000000e+00> : vector<2x128xf32>
    %528 = tpu.matmul %517, %8, %cst_246 {dimension_numbers = #tpu.dot_dimension_numbers<[1], [0], [0], [1], [0, 0, 1, 1], [], []>} : vector<2x32xf32>, vector<32x128xf32>, vector<2x128xf32> -> vector<2x128xf32>
    %cst_247 = arith.constant dense<0.000000e+00> : vector<2x128xf32>
    %529 = tpu.matmul %525, %6, %cst_247 {dimension_numbers = #tpu.dot_dimension_numbers<[1], [0], [0], [1], [0, 0, 1, 1], [], []>} : vector<2x32xf32>, vector<32x128xf32>, vector<2x128xf32> -> vector<2x128xf32>
    %530 = arith.addf %528, %529 : vector<2x128xf32>
    %531 = vector.broadcast %10 : vector<1x128xf32> to vector<2x128xf32>
    %532 = arith.addf %530, %531 : vector<2x128xf32>
    %533 = vector.extract_strided_slice %532 {offsets = [0, 0], sizes = [2, 32], strides = [1, 1]} : vector<2x128xf32> to vector<2x32xf32>
    %534 = arith.negf %533 : vector<2x32xf32>
    %535 = math.exp %534 : vector<2x32xf32>
    %cst_248 = arith.constant 1.000000e+00 : f32
    %536 = vector.broadcast %cst_248 : f32 to vector<2x32xf32>
    %537 = arith.addf %536, %535 : vector<2x32xf32>
    %538 = arith.divf %536, %537 : vector<2x32xf32>
    %539 = vector.extract_strided_slice %532 {offsets = [0, 32], sizes = [2, 32], strides = [1, 1]} : vector<2x128xf32> to vector<2x32xf32>
    %540 = arith.negf %539 : vector<2x32xf32>
    %541 = math.exp %540 : vector<2x32xf32>
    %cst_249 = arith.constant 1.000000e+00 : f32
    %542 = vector.broadcast %cst_249 : f32 to vector<2x32xf32>
    %543 = arith.addf %542, %541 : vector<2x32xf32>
    %544 = arith.divf %542, %543 : vector<2x32xf32>
    %545 = vector.extract_strided_slice %532 {offsets = [0, 64], sizes = [2, 32], strides = [1, 1]} : vector<2x128xf32> to vector<2x32xf32>
    %546 = math.tanh %545 : vector<2x32xf32>
    %547 = vector.extract_strided_slice %532 {offsets = [0, 96], sizes = [2, 32], strides = [1, 1]} : vector<2x128xf32> to vector<2x32xf32>
    %548 = arith.negf %547 : vector<2x32xf32>
    %549 = math.exp %548 : vector<2x32xf32>
    %cst_250 = arith.constant 1.000000e+00 : f32
    %550 = vector.broadcast %cst_250 : f32 to vector<2x32xf32>
    %551 = arith.addf %550, %549 : vector<2x32xf32>
    %552 = arith.divf %550, %551 : vector<2x32xf32>
    %553 = arith.mulf %544, %527 : vector<2x32xf32>
    %554 = arith.mulf %538, %546 : vector<2x32xf32>
    %555 = arith.addf %553, %554 : vector<2x32xf32>
    %556 = math.tanh %555 : vector<2x32xf32>
    %557 = arith.mulf %552, %556 : vector<2x32xf32>
    %c1_251 = arith.constant 1 : index
    %c0_252 = arith.constant 0 : index
    %c0_253 = arith.constant 0 : index
    %558 = vector.load %arg7[%c1_251, %c0_252, %c0_253] : memref<2x2x32xf32, #tpu.memory_space<vmem>>, vector<1x2x32xf32>
    %559 = vector.shape_cast %558 : vector<1x2x32xf32> to vector<2x32xf32>
    %560 = vector.shape_cast %557 : vector<2x32xf32> to vector<1x2x32xf32>
    tpu.vector_store %arg7[%c1_251, %c0_252, %c0_253], %560 {strides = array<i32>} : memref<2x2x32xf32, #tpu.memory_space<vmem>>, vector<1x2x32xf32>,
    %c1_254 = arith.constant 1 : index
    %c0_255 = arith.constant 0 : index
    %c0_256 = arith.constant 0 : index
    %561 = vector.load %arg8[%c1_254, %c0_255, %c0_256] : memref<2x2x32xf32, #tpu.memory_space<vmem>>, vector<1x2x32xf32>
    %562 = vector.shape_cast %561 : vector<1x2x32xf32> to vector<2x32xf32>
    %563 = vector.shape_cast %555 : vector<2x32xf32> to vector<1x2x32xf32>
    tpu.vector_store %arg8[%c1_254, %c0_255, %c0_256], %563 {strides = array<i32>} : memref<2x2x32xf32, #tpu.memory_space<vmem>>, vector<1x2x32xf32>,
    %c0_257 = arith.constant 0 : index
    %c0_258 = arith.constant 0 : index
    %c0_259 = arith.constant 0 : index
    %564 = vector.load %arg7[%c0_257, %c0_258, %c0_259] : memref<2x2x32xf32, #tpu.memory_space<vmem>>, vector<1x2x32xf32>
    %565 = vector.shape_cast %564 : vector<1x2x32xf32> to vector<2x32xf32>
    %c0_260 = arith.constant 0 : index
    %c0_261 = arith.constant 0 : index
    %c0_262 = arith.constant 0 : index
    %566 = vector.load %arg8[%c0_260, %c0_261, %c0_262] : memref<2x2x32xf32, #tpu.memory_space<vmem>>, vector<1x2x32xf32>
    %567 = vector.shape_cast %566 : vector<1x2x32xf32> to vector<2x32xf32>
    %c7 = arith.constant 7 : index
    %c0_263 = arith.constant 0 : index
    %c0_264 = arith.constant 0 : index
    %568 = vector.load %arg1[%c7, %c0_263, %c0_264] : memref<8x2x128xf32, #tpu.memory_space<vmem>>, vector<1x2x128xf32>
    %569 = vector.shape_cast %568 : vector<1x2x128xf32> to vector<2x128xf32>
    %cst_265 = arith.constant dense<0.000000e+00> : vector<2x128xf32>
    %570 = tpu.matmul %565, %4, %cst_265 {dimension_numbers = #tpu.dot_dimension_numbers<[1], [0], [0], [1], [0, 0, 1, 1], [], []>} : vector<2x32xf32>, vector<32x128xf32>, vector<2x128xf32> -> vector<2x128xf32>
    %571 = arith.addf %569, %570 : vector<2x128xf32>
    %572 = vector.extract_strided_slice %571 {offsets = [0, 0], sizes = [2, 32], strides = [1, 1]} : vector<2x128xf32> to vector<2x32xf32>
    %573 = arith.negf %572 : vector<2x32xf32>
    %574 = math.exp %573 : vector<2x32xf32>
    %cst_266 = arith.constant 1.000000e+00 : f32
    %575 = vector.broadcast %cst_266 : f32 to vector<2x32xf32>
    %576 = arith.addf %575, %574 : vector<2x32xf32>
    %577 = arith.divf %575, %576 : vector<2x32xf32>
    %578 = vector.extract_strided_slice %571 {offsets = [0, 32], sizes = [2, 32], strides = [1, 1]} : vector<2x128xf32> to vector<2x32xf32>
    %579 = arith.negf %578 : vector<2x32xf32>
    %580 = math.exp %579 : vector<2x32xf32>
    %cst_267 = arith.constant 1.000000e+00 : f32
    %581 = vector.broadcast %cst_267 : f32 to vector<2x32xf32>
    %582 = arith.addf %581, %580 : vector<2x32xf32>
    %583 = arith.divf %581, %582 : vector<2x32xf32>
    %584 = vector.extract_strided_slice %571 {offsets = [0, 64], sizes = [2, 32], strides = [1, 1]} : vector<2x128xf32> to vector<2x32xf32>
    %585 = math.tanh %584 : vector<2x32xf32>
    %586 = vector.extract_strided_slice %571 {offsets = [0, 96], sizes = [2, 32], strides = [1, 1]} : vector<2x128xf32> to vector<2x32xf32>
    %587 = arith.negf %586 : vector<2x32xf32>
    %588 = math.exp %587 : vector<2x32xf32>
    %cst_268 = arith.constant 1.000000e+00 : f32
    %589 = vector.broadcast %cst_268 : f32 to vector<2x32xf32>
    %590 = arith.addf %589, %588 : vector<2x32xf32>
    %591 = arith.divf %589, %590 : vector<2x32xf32>
    %592 = arith.mulf %583, %567 : vector<2x32xf32>
    %593 = arith.mulf %577, %585 : vector<2x32xf32>
    %594 = arith.addf %592, %593 : vector<2x32xf32>
    %595 = math.tanh %594 : vector<2x32xf32>
    %596 = arith.mulf %591, %595 : vector<2x32xf32>
    %c0_269 = arith.constant 0 : index
    %c0_270 = arith.constant 0 : index
    %c0_271 = arith.constant 0 : index
    %597 = vector.load %arg7[%c0_269, %c0_270, %c0_271] : memref<2x2x32xf32, #tpu.memory_space<vmem>>, vector<1x2x32xf32>
    %598 = vector.shape_cast %597 : vector<1x2x32xf32> to vector<2x32xf32>
    %599 = vector.shape_cast %596 : vector<2x32xf32> to vector<1x2x32xf32>
    tpu.vector_store %arg7[%c0_269, %c0_270, %c0_271], %599 {strides = array<i32>} : memref<2x2x32xf32, #tpu.memory_space<vmem>>, vector<1x2x32xf32>,
    %c0_272 = arith.constant 0 : index
    %c0_273 = arith.constant 0 : index
    %c0_274 = arith.constant 0 : index
    %600 = vector.load %arg8[%c0_272, %c0_273, %c0_274] : memref<2x2x32xf32, #tpu.memory_space<vmem>>, vector<1x2x32xf32>
    %601 = vector.shape_cast %600 : vector<1x2x32xf32> to vector<2x32xf32>
    %602 = vector.shape_cast %594 : vector<2x32xf32> to vector<1x2x32xf32>
    tpu.vector_store %arg8[%c0_272, %c0_273, %c0_274], %602 {strides = array<i32>} : memref<2x2x32xf32, #tpu.memory_space<vmem>>, vector<1x2x32xf32>,
    %c1_275 = arith.constant 1 : index
    %c0_276 = arith.constant 0 : index
    %c0_277 = arith.constant 0 : index
    %603 = vector.load %arg7[%c1_275, %c0_276, %c0_277] : memref<2x2x32xf32, #tpu.memory_space<vmem>>, vector<1x2x32xf32>
    %604 = vector.shape_cast %603 : vector<1x2x32xf32> to vector<2x32xf32>
    %c1_278 = arith.constant 1 : index
    %c0_279 = arith.constant 0 : index
    %c0_280 = arith.constant 0 : index
    %605 = vector.load %arg8[%c1_278, %c0_279, %c0_280] : memref<2x2x32xf32, #tpu.memory_space<vmem>>, vector<1x2x32xf32>
    %606 = vector.shape_cast %605 : vector<1x2x32xf32> to vector<2x32xf32>
    %cst_281 = arith.constant dense<0.000000e+00> : vector<2x128xf32>
    %607 = tpu.matmul %596, %8, %cst_281 {dimension_numbers = #tpu.dot_dimension_numbers<[1], [0], [0], [1], [0, 0, 1, 1], [], []>} : vector<2x32xf32>, vector<32x128xf32>, vector<2x128xf32> -> vector<2x128xf32>
    %cst_282 = arith.constant dense<0.000000e+00> : vector<2x128xf32>
    %608 = tpu.matmul %604, %6, %cst_282 {dimension_numbers = #tpu.dot_dimension_numbers<[1], [0], [0], [1], [0, 0, 1, 1], [], []>} : vector<2x32xf32>, vector<32x128xf32>, vector<2x128xf32> -> vector<2x128xf32>
    %609 = arith.addf %607, %608 : vector<2x128xf32>
    %610 = vector.broadcast %10 : vector<1x128xf32> to vector<2x128xf32>
    %611 = arith.addf %609, %610 : vector<2x128xf32>
    %612 = vector.extract_strided_slice %611 {offsets = [0, 0], sizes = [2, 32], strides = [1, 1]} : vector<2x128xf32> to vector<2x32xf32>
    %613 = arith.negf %612 : vector<2x32xf32>
    %614 = math.exp %613 : vector<2x32xf32>
    %cst_283 = arith.constant 1.000000e+00 : f32
    %615 = vector.broadcast %cst_283 : f32 to vector<2x32xf32>
    %616 = arith.addf %615, %614 : vector<2x32xf32>
    %617 = arith.divf %615, %616 : vector<2x32xf32>
    %618 = vector.extract_strided_slice %611 {offsets = [0, 32], sizes = [2, 32], strides = [1, 1]} : vector<2x128xf32> to vector<2x32xf32>
    %619 = arith.negf %618 : vector<2x32xf32>
    %620 = math.exp %619 : vector<2x32xf32>
    %cst_284 = arith.constant 1.000000e+00 : f32
    %621 = vector.broadcast %cst_284 : f32 to vector<2x32xf32>
    %622 = arith.addf %621, %620 : vector<2x32xf32>
    %623 = arith.divf %621, %622 : vector<2x32xf32>
    %624 = vector.extract_strided_slice %611 {offsets = [0, 64], sizes = [2, 32], strides = [1, 1]} : vector<2x128xf32> to vector<2x32xf32>
    %625 = math.tanh %624 : vector<2x32xf32>
    %626 = vector.extract_strided_slice %611 {offsets = [0, 96], sizes = [2, 32], strides = [1, 1]} : vector<2x128xf32> to vector<2x32xf32>
    %627 = arith.negf %626 : vector<2x32xf32>
    %628 = math.exp %627 : vector<2x32xf32>
    %cst_285 = arith.constant 1.000000e+00 : f32
    %629 = vector.broadcast %cst_285 : f32 to vector<2x32xf32>
    %630 = arith.addf %629, %628 : vector<2x32xf32>
    %631 = arith.divf %629, %630 : vector<2x32xf32>
    %632 = arith.mulf %623, %606 : vector<2x32xf32>
    %633 = arith.mulf %617, %625 : vector<2x32xf32>
    %634 = arith.addf %632, %633 : vector<2x32xf32>
    %635 = math.tanh %634 : vector<2x32xf32>
    %636 = arith.mulf %631, %635 : vector<2x32xf32>
    %c1_286 = arith.constant 1 : index
    %c0_287 = arith.constant 0 : index
    %c0_288 = arith.constant 0 : index
    %637 = vector.load %arg7[%c1_286, %c0_287, %c0_288] : memref<2x2x32xf32, #tpu.memory_space<vmem>>, vector<1x2x32xf32>
    %638 = vector.shape_cast %637 : vector<1x2x32xf32> to vector<2x32xf32>
    %639 = vector.shape_cast %636 : vector<2x32xf32> to vector<1x2x32xf32>
    tpu.vector_store %arg7[%c1_286, %c0_287, %c0_288], %639 {strides = array<i32>} : memref<2x2x32xf32, #tpu.memory_space<vmem>>, vector<1x2x32xf32>,
    %c1_289 = arith.constant 1 : index
    %c0_290 = arith.constant 0 : index
    %c0_291 = arith.constant 0 : index
    %640 = vector.load %arg8[%c1_289, %c0_290, %c0_291] : memref<2x2x32xf32, #tpu.memory_space<vmem>>, vector<1x2x32xf32>
    %641 = vector.shape_cast %640 : vector<1x2x32xf32> to vector<2x32xf32>
    %642 = vector.shape_cast %634 : vector<2x32xf32> to vector<1x2x32xf32>
    tpu.vector_store %arg8[%c1_289, %c0_290, %c0_291], %642 {strides = array<i32>} : memref<2x2x32xf32, #tpu.memory_space<vmem>>, vector<1x2x32xf32>,
    %c0_i32_292 = arith.constant 0 : i32
    %643 = arith.cmpi eq, %arg0, %c0_i32_292 : i32
    %644 = arith.extui %643 : i1 to i32
    %c0_i32_293 = arith.constant 0 : i32
    %645 = arith.cmpi ne, %644, %c0_i32_293 : i32
    scf.if %645 {
      %c0_294 = arith.constant 0 : index
      %c0_295 = arith.constant 0 : index
      %c0_296 = arith.constant 0 : index
      %646 = vector.load %arg7[%c0_294, %c0_295, %c0_296] : memref<2x2x32xf32, #tpu.memory_space<vmem>>, vector<2x2x32xf32>
      %cst_297 = arith.constant 0.000000e+00 : f32
      %647 = vector.broadcast %cst_297 : f32 to vector<2x2x32xf32>
      %648 = arith.maximumf %646, %647 : vector<2x2x32xf32>
      %c0_298 = arith.constant 0 : index
      %c0_299 = arith.constant 0 : index
      %c0_300 = arith.constant 0 : index
      %649 = vector.load %arg5[%c0_298, %c0_299, %c0_300] : memref<2x2x32xf32, #tpu.memory_space<vmem>>, vector<2x2x32xf32>
      tpu.vector_store %arg5[%c0_298, %c0_299, %c0_300], %648 {strides = array<i32>} : memref<2x2x32xf32, #tpu.memory_space<vmem>>, vector<2x2x32xf32>,
      %c0_301 = arith.constant 0 : index
      %c0_302 = arith.constant 0 : index
      %c0_303 = arith.constant 0 : index
      %650 = vector.load %arg8[%c0_301, %c0_302, %c0_303] : memref<2x2x32xf32, #tpu.memory_space<vmem>>, vector<2x2x32xf32>
      %c0_304 = arith.constant 0 : index
      %c0_305 = arith.constant 0 : index
      %c0_306 = arith.constant 0 : index
      %651 = vector.load %arg6[%c0_304, %c0_305, %c0_306] : memref<2x2x32xf32, #tpu.memory_space<vmem>>, vector<2x2x32xf32>
      tpu.vector_store %arg6[%c0_304, %c0_305, %c0_306], %650 {strides = array<i32>} : memref<2x2x32xf32, #tpu.memory_space<vmem>>, vector<2x2x32xf32>,
    } else {
    }
    return
  }
  func.func @transform_0(%arg0: i32) -> (i32, i32, i32) {
    %c0_i32 = arith.constant 0 : i32
    %c0_i32_0 = arith.constant 0 : i32
    %c0_i32_1 = arith.constant 0 : i32
    return %arg0, %c0_i32, %c0_i32_0 : i32, i32, i32
  }
  func.func @transform_1(%arg0: i32) -> (i32, i32, i32) {
    %c0_i32 = arith.constant 0 : i32
    %c0_i32_0 = arith.constant 0 : i32
    %c0_i32_1 = arith.constant 0 : i32
    %c0_i32_2 = arith.constant 0 : i32
    return %c0_i32, %c0_i32_0, %c0_i32_1 : i32, i32, i32
  }
  func.func @transform_2(%arg0: i32) -> (i32, i32, i32) {
    %c0_i32 = arith.constant 0 : i32
    %c0_i32_0 = arith.constant 0 : i32
    %c0_i32_1 = arith.constant 0 : i32
    %c0_i32_2 = arith.constant 0 : i32
    return %c0_i32, %c0_i32_0, %c0_i32_1 : i32, i32, i32
  }
  func.func @transform_3(%arg0: i32) -> (i32, i32, i32) {
    %c0_i32 = arith.constant 0 : i32
    %c0_i32_0 = arith.constant 0 : i32
    %c0_i32_1 = arith.constant 0 : i32
    %c0_i32_2 = arith.constant 0 : i32
    return %c0_i32, %c0_i32_0, %c0_i32_1 : i32, i32, i32
  }
  func.func @transform_4(%arg0: i32) -> (i32, i32, i32) {
    %c0_i32 = arith.constant 0 : i32
    %c0_i32_0 = arith.constant 0 : i32
    %c0_i32_1 = arith.constant 0 : i32
    %c0_i32_2 = arith.constant 0 : i32
    return %c0_i32, %c0_i32_0, %c0_i32_1 : i32, i32, i32
  }
  func.func @transform_5(%arg0: i32) -> (i32, i32, i32) {
    %c0_i32 = arith.constant 0 : i32
    %c0_i32_0 = arith.constant 0 : i32
    %c0_i32_1 = arith.constant 0 : i32
    %c0_i32_2 = arith.constant 0 : i32
    return %c0_i32, %c0_i32_0, %c0_i32_1 : i32, i32, i32
  }
}

</mosaic_0001>

<bundles_post_ra>
// kernel: rnn_encoder_forward.1
= control target key start
LH: loop header
LB: loop body
LE: loop exit
PB: predicated region body
PF: predicated region fallthrough
CT: control target
= control target key end

     0   :  { %11 = vsyncpa [#allocation5], 0  ;;  %vm25_vm0 = vcmask 254976   ;;  %v1774_v3 = vmov 0.0   ;;  %s2187_s0 = inlined_call_operand.vmem [shape: f32[8,2,128], index: 0, kind: input, shape index: {}]   ;;  %s2188_s1 = inlined_call_operand.vmem [shape: f32[2,32,128], index: 1, kind: input, shape index: {}]   ;;  %s2189_s2 = inlined_call_operand.vmem [shape: f32[2,32,128], index: 2, kind: input, shape index: {}]   ;;  %s2190_s3 = inlined_call_operand.vmem [shape: f32[2,1,128], index: 3, kind: input, shape index: {}]   ;;  %s2191_s4 = inlined_call_operand.hbm [shape: f32[2,2,32], index: 4, kind: output, shape index: {0}]   ;;  %s2192_s5 = inlined_call_operand.hbm [shape: f32[2,2,32], index: 5, kind: output, shape index: {1}]  }
   0x1   :  { %v1814_v0 = vld [vmem:[%s2189_s2 + $0x18] sm:$0xff]  ;;  %v1819_v1 = vld [vmem:[%s2189_s2 + $0x10] sm:$0xff]  ;;  %v1825_v2 = vld [vmem:[%s2189_s2 + $0x8] sm:$0xff]  ;;  %26 = vst.msk [vmem:[#allocation2] sm:$0x3] %vm25_vm0, %v1774_v3 }
   0x2   :  { %65 = vmatpush.msra.mxu0 %v1814_v0  ;;  %249 = vmatpush.msra.mxu3 %v1814_v0  ;;  %27 = vst.msk [vmem:[#allocation2 + $0x2] sm:$0x3] %vm25_vm0, %v1774_v3 }
   0x3   :  { %12 = vsyncpa [#allocation7], 0  ;;  %28 = vst.msk [vmem:[#allocation3] sm:$0x3] %vm25_vm0, %v1774_v3  ;;  %v1836_v4 = vld [vmem:[%s2189_s2] sm:$0xff]  ;;  %vm49_vm1 = vcmask 261120  }
   0x4   :  { %66 = vmatpush.msra.mxu0 %v1819_v1  ;;  %250 = vmatpush.msra.mxu3 %v1819_v1  ;;  %29 = vst.msk [vmem:[#allocation3 + $0x2] sm:$0x3] %vm25_vm0, %v1774_v3  ;;  %v48_v6 = vld [vmem:[%s2187_s0] sm:$0x3]  ;;  %s1775_s28 = smov 64   ;;  %s1776_s29 = smov 32  }
   0x5   :  { %v1854_v31 = vld [vmem:[%s2188_s1 + $0x38] sm:$0xff]  ;;  %v1859_v32 = vld [vmem:[%s2188_s1 + $0x30] sm:$0xff]  ;;  %v1870_v34 = vld [vmem:[%s2188_s1 + $0x28] sm:$0xff]  ;;  %s1777_s15 = smov 96   ;;  %s1508_s25 = sshll.u32 %s2192_s5, 4  ;;  %s1509_s25 = int_to_ptr.hbm [resolvable:$true] %s1508_s25 }
   0x6   :  { %67 = vmatpush.msra.mxu0 %v1825_v2  ;;  %251 = vmatpush.msra.mxu3 %v1825_v2  ;;  %v1865_v33 = vld [vmem:[%s2189_s2 + $0x38] sm:$0xff]  ;;  %v1879_v35 = vld [vmem:[%s2188_s1 + $0x20] sm:$0xff]  ;;  %v1892_v38 = vld [vmem:[%s2189_s2 + $0x30] sm:$0xff]  ;;  %s1495_s6 = sshll.u32 %s2191_s4, 4  ;;  %s1496_s6 = int_to_ptr.hbm [resolvable:$true] %s1495_s6 }
   0x7   :  { %167 = vmatpush.msra.mxu2 %v1854_v31  ;;  %145 = vmatpush.msra.mxu1 %v1865_v33  ;;  %v1897_v39 = vld [vmem:[%s2189_s2 + $0x28] sm:$0xff]  ;;  %v1904_v40 = vld [vmem:[%s2189_s2 + $0x20] sm:$0xff] }
   0x8   :  { %68 = vmatpush.msra.mxu0 %v1836_v4  ;;  %252 = vmatpush.msra.mxu3 %v1836_v4  ;;  %v46_v5 = vld [vmem:[#allocation2] sm:$0x3]  ;;  %v1539_v51 = vld [vmem:[%s2187_s0 + $0x2] sm:$0x3] }
   0x9   :  { %1534 = vmatmul.msk.f32.vlgmr.msra.gmra.mxu0 %vm49_vm1, %v46_v5  ;;  %168 = vmatpush.msra.mxu2 %v1859_v32  ;;  %v127_v41 = vld [vmem:[#allocation2 + $0x2] sm:$0x3]  ;;  %v1942_v47 = vld [vmem:[%s2190_s3 + $0x1] ss:$0 sm:$0xff] }
   0xa   :  { %v47_v10 = vld [vmem:[#allocation3] sm:$0x3]  ;;  %326 = vmatpush.msrb.mxu0 %v1865_v33  ;;  %504 = vmatpush.msrb.mxu3 %v1865_v33 }
   0xb   :  { %169 = vmatpush.msra.mxu2 %v1870_v34  ;;  %146 = vmatpush.msra.mxu1 %v1892_v38  ;;  %v129_v42 = vld [vmem:[#allocation3 + $0x2] sm:$0x3] }
   0xc   :  { %327 = vmatpush.msrb.mxu0 %v1892_v38  ;;  %505 = vmatpush.msrb.mxu3 %v1892_v38 }
   0xd   :  { %170 = vmatpush.msra.mxu2 %v1879_v35  ;;  %147 = vmatpush.msra.mxu1 %v1897_v39 }
   0xe   :  { %328 = vmatpush.msrb.mxu0 %v1897_v39  ;;  %506 = vmatpush.msrb.mxu3 %v1897_v39 }
   0xf   :  { %427 = vmatpush.msrb.mxu2 %v1814_v0  ;;  %148 = vmatpush.msra.mxu1 %v1904_v40 }
  0x10   :  { %329 = vmatpush.msrb.mxu0 %v1904_v40  ;;  %1536 = vmatmul.msk.f32.vlgmr.msra.gmra.mxu1 %vm49_vm1, %v127_v41 }
  0x11   :  { %428 = vmatpush.msrb.mxu2 %v1819_v1  ;;  %507 = vmatpush.msrb.mxu3 %v1904_v40 }
  0x12   :  { %348 = vmatpush.msrb.mxu1 %v1854_v31  ;;  %526 = vmatpush.msra.mxu0 %v1854_v31 }
  0x13   :  { %429 = vmatpush.msrb.mxu2 %v1825_v2 }
  0x14   :  { %349 = vmatpush.msrb.mxu1 %v1859_v32  ;;  %527 = vmatpush.msra.mxu0 %v1859_v32 }
  0x15   :  { %430 = vmatpush.msrb.mxu2 %v1836_v4 }
  0x16   :  { %350 = vmatpush.msrb.mxu1 %v1870_v34  ;;  %528 = vmatpush.msra.mxu0 %v1870_v34 }
  0x18   :  { %351 = vmatpush.msrb.mxu1 %v1879_v35  ;;  %529 = vmatpush.msra.mxu0 %v1879_v35 }
  0x1a   :  { %605 = vmatpush.msra.mxu1 %v1814_v0 }
  0x1c   :  { %606 = vmatpush.msra.mxu1 %v1819_v1 }
  0x1e   :  { %607 = vmatpush.msra.mxu1 %v1825_v2 }
  0x20   :  { %608 = vmatpush.msra.mxu1 %v1836_v4 }
  0x86   :  { %v70_v7 = vpop.f32.mrf.mxu0 }
  0x87   :  { %v73_v8 = vadd.f32 %v70_v7, %v48_v6 }
  0x89   :  { %1589 = vtanh.f32 %v73_v8  ;;  %v1535_v11 = vmul.f32 -1.442695, %v73_v8 }
  0x8b   :  { %1591 = vpow2.f32 %v1535_v11 }
  0x8d   :  { %v150_v46 = vpop.f32.mrf.mxu1 }
  0x8f   :  { %v1590_v9 = vpop.eup %1589 }
  0x90   :  { %100 = vrot.lane.b32.xlu0 %v1590_v9, %s1775_s28 }
  0x91   :  { %v1592_v12 = vpop.eup %1591 }
  0x92   :  { %v77_v13 = vadd.f32 1.0, %v1592_v12 }
  0x94   :  { %1593 = vrcp.f32 %v77_v13  ;;  %v89_v19 = vand.u32 2147483648, %v77_v13  ;;  %vm83_vm3 = vweird.f32 %v77_v13  ;;  %v87_v20 = vand.u32 2147483647, %v77_v13 }
  0x96   :  { %v90_v22 = vor.u32 1.1754944e-38, %v89_v19  ;;  %vm88_vm5 = vcmp.eq.f32.partialorder %v87_v20, 8.507059e+37 }
  0x98   :  { %95 = vrot.lane.b32.xlu0 %v47_v10, %s1776_s29 }
  0x9a   :  { %v1594_v14 = vpop.eup %1593 }
  0x9b   :  { %v79_v15 = vmul.f32 %v1594_v14, %v77_v13  ;;  %vm84_vm2 = vweird.f32 %v1594_v14 }
  0x9c   :  { %vm85_vm4 = vmor %vm83_vm3, %vm84_vm2 }
  0x9d   :  { %v80_v16 = vsub.f32 1.0, %v79_v15 }
  0x9f   :  { %v81_v17 = vmul.f32 %v1594_v14, %v80_v16 }
  0xa1   :  { %v82_v18 = vadd.f32 %v1594_v14, %v81_v17 }
  0xa3   :  { %v86_v21 = vsel %vm85_vm4, %v1594_v14, %v82_v18 }
  0xa4   :  { %v91_v24 = vsel %vm88_vm5, %v90_v22, %v86_v21 }
 0x102   :  { %v101_v23 = vpop.permute.xlu0 %100 }
 0x103   :  { %v103_v25 = vmul.f32 %v101_v23, %v91_v24 }
 0x105   :  { %105 = vrot.lane.b32.xlu1 %v103_v25, %s1776_s29 }
 0x10a   :  { %v96_v26 = vpop.permute.xlu0 %95 }
 0x10b   :  { %v98_v27 = vmul.f32 %v96_v26, %v91_v24 }
 0x177   :  { %v106_v28 = vpop.permute.xlu1 %105 }
 0x178   :  { %v108_v29 = vadd.f32 %v106_v28, %v98_v27 }
 0x17a   :  { %1595 = vtanh.f32 %v108_v29 }
 0x180   :  { %v1596_v30 = vpop.eup %1595 }
 0x181   :  { %111 = vrot.lane.b32.xlu1 %v1596_v30, %s1775_s28 }
 0x1f3   :  { %v112_v36 = vpop.permute.xlu1 %111 }
 0x1f4   :  { %v114_v37 = vmul.f32 %v112_v36, %v91_v24 }
 0x1f6   :  { %116 = vrot.lane.b32.xlu2 %v114_v37, %s1776_s29 }
 0x1fe   :  { %122 = vrot.lane.b32.xlu2 %v108_v29, %s1777_s15 }
 0x206   :  { %200 = vrot.lane.b32.xlu2 %v129_v42, %s1776_s29 }
 0x250   :  { %v117_v43 = vpop.permute.xlu2 %116 }
 0x251   :  { %120 = vst.msk [vmem:[#allocation2] sm:$0x3] %vm25_vm0, %v117_v43  ;;  %1537 = vmatmul.msk.f32.vlgmr.msra.gmra.mxu2 %vm49_vm1, %v117_v43 }
 0x252   :  { %682 = vmatpush.msra.mxu2 %v1865_v33 }
 0x254   :  { %683 = vmatpush.msra.mxu2 %v1892_v38 }
 0x256   :  { %684 = vmatpush.msra.mxu2 %v1897_v39 }
 0x258   :  { %v123_v44 = vpop.permute.xlu2 %122  ;;  %v230_v45 = vld [vmem:[#allocation2] sm:$0x3]  ;;  %685 = vmatpush.msra.mxu2 %v1904_v40 }
 0x259   :  { %125 = vst.msk [vmem:[#allocation3] sm:$0x3] %vm25_vm0, %v123_v44  ;;  %1540 = vmatmul.msk.f32.vlgmr.msra.gmra.mxu3 %vm49_vm1, %v230_v45 }
 0x25a   :  { %704 = vmatpush.msra.mxu3 %v1854_v31 }
 0x25c   :  { %705 = vmatpush.msra.mxu3 %v1859_v32 }
 0x25e   :  { %706 = vmatpush.msra.mxu3 %v1870_v34 }
 0x260   :  { %707 = vmatpush.msra.mxu3 %v1879_v35  ;;  %v231_v56 = vld [vmem:[#allocation3] sm:$0x3]  ;;  %v201_v27 = vpop.permute.xlu2 %200 }
 0x2d4   :  { %v172_v48 = vpop.f32.mrf.mxu2 }
 0x2d5   :  { %v173_v49 = vadd.f32 %v172_v48, %v150_v46 }
 0x2d7   :  { %v178_v50 = vadd.f32 %v1942_v47, %v173_v49 }
 0x2d9   :  { %1597 = vtanh.f32 %v178_v50  ;;  %v1538_v57 = vmul.f32 -1.442695, %v178_v50 }
 0x2dc   :  { %v254_v52 = vpop.f32.mrf.mxu3 }
 0x2dd   :  { %v257_v53 = vadd.f32 %v1539_v51, %v254_v52 }
 0x2df   :  { %v1598_v54 = vpop.eup %1597  ;;  %1599 = vtanh.f32 %v257_v53  ;;  %v1541_v58 = vmul.f32 -1.442695, %v257_v53 }
 0x2e0   :  { %205 = vrot.lane.b32.xlu0 %v1598_v54, %s1775_s28  ;;  %1601 = vpow2.f32 %v1538_v57 }
 0x2e1   :  { %1603 = vpow2.f32 %v1541_v58 }
 0x2e5   :  { %v1600_v55 = vpop.eup %1599 }
 0x2e6   :  { %284 = vrot.lane.b32.xlu1 %v1600_v55, %s1775_s28  ;;  %v1602_v59 = vpop.eup %1601 }
 0x2e7   :  { %v182_v60 = vadd.f32 1.0, %v1602_v59  ;;  %v1604_v61 = vpop.eup %1603 }
 0x2e8   :  { %v261_v62 = vadd.f32 1.0, %v1604_v61 }
 0x2e9   :  { %1605 = vrcp.f32 %v182_v60  ;;  %v194_v11 = vand.u32 2147483648, %v182_v60  ;;  %vm188_vm7 = vweird.f32 %v182_v60  ;;  %v192_v12 = vand.u32 2147483647, %v182_v60 }
 0x2ea   :  { %1607 = vrcp.f32 %v261_v62  ;;  %v273_v19 = vand.u32 2147483648, %v261_v62  ;;  %vm267_vm11 = vweird.f32 %v261_v62  ;;  %v271_v21 = vand.u32 2147483647, %v261_v62 }
 0x2eb   :  { %v195_v15 = vor.u32 1.1754944e-38, %v194_v11  ;;  %vm193_vm9 = vcmp.eq.f32.partialorder %v192_v12, 8.507059e+37 }
 0x2ec   :  { %v274_v23 = vor.u32 1.1754944e-38, %v273_v19  ;;  %vm272_vm13 = vcmp.eq.f32.partialorder %v271_v21, 8.507059e+37 }
 0x2ee   :  { %279 = vrot.lane.b32.xlu1 %v231_v56, %s1776_s29 }
 0x2ef   :  { %v1606_v63 = vpop.eup %1605 }
 0x2f0   :  { %v184_v3 = vmul.f32 %v1606_v63, %v182_v60  ;;  %v1608_v5 = vpop.eup %1607  ;;  %vm189_vm6 = vweird.f32 %v1606_v63  ;;  %v1545_v60 = vld [vmem:[%s2187_s0 + $0x4] sm:$0x3] }
 0x2f1   :  { %v263_v7 = vmul.f32 %v1608_v5, %v261_v62  ;;  %vm190_vm8 = vmor %vm188_vm7, %vm189_vm6  ;;  %vm268_vm10 = vweird.f32 %v1608_v5 }
 0x2f2   :  { %v185_v6 = vsub.f32 1.0, %v184_v3  ;;  %vm269_vm12 = vmor %vm267_vm11, %vm268_vm10 }
 0x2f3   :  { %v264_v9 = vsub.f32 1.0, %v263_v7 }
 0x2f4   :  { %v186_v8 = vmul.f32 %v1606_v63, %v185_v6 }
 0x2f5   :  { %v265_v13 = vmul.f32 %v1608_v5, %v264_v9 }
 0x2f6   :  { %v187_v10 = vadd.f32 %v1606_v63, %v186_v8 }
 0x2f7   :  { %v266_v16 = vadd.f32 %v1608_v5, %v265_v13 }
 0x2f8   :  { %v191_v14 = vsel %vm190_vm8, %v1606_v63, %v187_v10 }
 0x2f9   :  { %v196_v17 = vsel %vm193_vm9, %v195_v15, %v191_v14  ;;  %v270_v22 = vsel %vm269_vm12, %v1608_v5, %v266_v16 }
 0x2fa   :  { %v275_v25 = vsel %vm272_vm13, %v274_v23, %v270_v22  ;;  %v203_v41 = vmul.f32 %v201_v27, %v196_v17 }
 0x352   :  { %v206_v18 = vpop.permute.xlu0 %205 }
 0x353   :  { %v208_v20 = vmul.f32 %v206_v18, %v196_v17 }
 0x355   :  { %210 = vrot.lane.b32.xlu0 %v208_v20, %s1776_s29 }
 0x358   :  { %v285_v24 = vpop.permute.xlu1 %284 }
 0x359   :  { %v287_v26 = vmul.f32 %v285_v24, %v275_v25 }
 0x35b   :  { %289 = vrot.lane.b32.xlu2 %v287_v26, %s1776_s29 }
 0x360   :  { %v280_v28 = vpop.permute.xlu1 %279 }
 0x361   :  { %v282_v29 = vmul.f32 %v280_v28, %v275_v25 }
 0x3b5   :  { %v290_v30 = vpop.permute.xlu2 %289 }
 0x3b6   :  { %v292_v36 = vadd.f32 %v290_v30, %v282_v29 }
 0x3b8   :  { %1609 = vtanh.f32 %v292_v36 }
 0x3be   :  { %v1610_v37 = vpop.eup %1609 }
 0x3bf   :  { %295 = vrot.lane.b32.xlu1 %v1610_v37, %s1775_s28 }
 0x3c7   :  { %v211_v42 = vpop.permute.xlu0 %210 }
 0x3c8   :  { %v213_v43 = vadd.f32 %v211_v42, %v203_v41 }
 0x3ca   :  { %1611 = vtanh.f32 %v213_v43  ;;  %226 = vrot.lane.b32.xlu1 %v213_v43, %s1777_s15 }
 0x3d0   :  { %v1612_v44 = vpop.eup %1611 }
 0x3d1   :  { %216 = vrot.lane.b32.xlu0 %v1612_v44, %s1775_s28 }
 0x431   :  { %v296_v45 = vpop.permute.xlu1 %295 }
 0x432   :  { %v298_v46 = vmul.f32 %v296_v45, %v275_v25 }
 0x434   :  { %300 = vrot.lane.b32.xlu0 %v298_v46, %s1776_s29 }
 0x43c   :  { %305 = vrot.lane.b32.xlu0 %v292_v36, %s1777_s15  ;;  %v227_v48 = vpop.permute.xlu1 %226 }
 0x43d   :  { %229 = vst.msk [vmem:[#allocation3 + $0x2] sm:$0x3] %vm25_vm0, %v227_v48 }
 0x443   :  { %v217_v49 = vpop.permute.xlu0 %216 }
 0x444   :  { %v219_v50 = vmul.f32 %v217_v49, %v196_v17  ;;  %v310_v3 = vld [vmem:[#allocation3 + $0x2] sm:$0x3] }
 0x446   :  { %221 = vrot.lane.b32.xlu2 %v219_v50, %s1776_s29 }
 0x4a0   :  { %v222_v51 = vpop.permute.xlu2 %221 }
 0x4a1   :  { %224 = vst.msk [vmem:[#allocation2 + $0x2] sm:$0x3] %vm25_vm0, %v222_v51 }
 0x4a6   :  { %v301_v52 = vpop.permute.xlu0 %300 }
 0x4a7   :  { %303 = vst.msk [vmem:[#allocation2] sm:$0x3] %vm25_vm0, %v301_v52  ;;  %1543 = vmatmul.msk.f32.vlgmr.msrb.gmra.mxu1 %vm49_vm1, %v301_v52 }
 0x4a8   :  { %v309_v53 = vld [vmem:[#allocation2 + $0x2] sm:$0x3]  ;;  %860 = vmatpush.msrb.mxu1 %v1865_v33 }
 0x4a9   :  { %1542 = vmatmul.msk.f32.vlgmr.msrb.gmra.mxu0 %vm49_vm1, %v309_v53 }
 0x4aa   :  { %783 = vmatpush.msrb.mxu0 %v1814_v0  ;;  %861 = vmatpush.msrb.mxu1 %v1892_v38 }
 0x4ac   :  { %784 = vmatpush.msrb.mxu0 %v1819_v1  ;;  %862 = vmatpush.msrb.mxu1 %v1897_v39 }
 0x4ae   :  { %v306_v54 = vpop.permute.xlu0 %305  ;;  %v408_v55 = vld [vmem:[#allocation2] sm:$0x3]  ;;  %785 = vmatpush.msrb.mxu0 %v1825_v2  ;;  %863 = vmatpush.msrb.mxu1 %v1904_v40 }
 0x4af   :  { %308 = vst.msk [vmem:[#allocation3] sm:$0x3] %vm25_vm0, %v306_v54  ;;  %1546 = vmatmul.msk.f32.vlgmr.msrb.gmra.mxu2 %vm49_vm1, %v408_v55 }
 0x4b0   :  { %786 = vmatpush.msrb.mxu0 %v1836_v4  ;;  %882 = vmatpush.msrb.mxu2 %v1854_v31 }
 0x4b2   :  { %883 = vmatpush.msrb.mxu2 %v1859_v32 }
 0x4b4   :  { %884 = vmatpush.msrb.mxu2 %v1870_v34 }
 0x4b6   :  { %885 = vmatpush.msrb.mxu2 %v1879_v35  ;;  %v409_v6 = vld [vmem:[#allocation3] sm:$0x3] }
 0x524   :  { %v353_v56 = vpop.f32.mrf.mxu1 }
 0x526   :  { %v331_v57 = vpop.f32.mrf.mxu0 }
 0x527   :  { %v354_v58 = vadd.f32 %v353_v56, %v331_v57 }
 0x529   :  { %v356_v59 = vadd.f32 %v1942_v47, %v354_v58 }
 0x52b   :  { %1613 = vtanh.f32 %v356_v59  ;;  %v1544_v7 = vmul.f32 -1.442695, %v356_v59 }
 0x531   :  { %v1614_v61 = vpop.eup %1613 }
 0x532   :  { %v432_v62 = vpop.f32.mrf.mxu2  ;;  %383 = vrot.lane.b32.xlu2 %v1614_v61, %s1775_s28 }
 0x533   :  { %v435_v63 = vadd.f32 %v1545_v60, %v432_v62 }
 0x535   :  { %1615 = vtanh.f32 %v435_v63  ;;  %v1547_v13 = vmul.f32 -1.442695, %v435_v63 }
 0x536   :  { %1617 = vpow2.f32 %v1544_v7 }
 0x53a   :  { %378 = vrot.lane.b32.xlu2 %v310_v3, %s1776_s29 }
 0x53b   :  { %v1616_v5 = vpop.eup %1615 }
 0x53c   :  { %462 = vrot.lane.b32.xlu1 %v1616_v5, %s1775_s28  ;;  %v1618_v8 = vpop.eup %1617 }
 0x53d   :  { %v360_v9 = vadd.f32 1.0, %v1618_v8 }
 0x53f   :  { %1619 = vrcp.f32 %v360_v9  ;;  %v372_v16 = vand.u32 2147483648, %v360_v9  ;;  %vm366_vm15 = vweird.f32 %v360_v9  ;;  %v370_v17 = vand.u32 2147483647, %v360_v9 }
 0x540   :  { %1621 = vpow2.f32 %v1547_v13 }
 0x541   :  { %v373_v19 = vor.u32 1.1754944e-38, %v372_v16  ;;  %vm371_vm3 = vcmp.eq.f32.partialorder %v370_v17, 8.507059e+37 }
 0x544   :  { %457 = vrot.lane.b32.xlu1 %v409_v6, %s1776_s29 }
 0x545   :  { %v1620_v10 = vpop.eup %1619 }
 0x546   :  { %v362_v11 = vmul.f32 %v1620_v10, %v360_v9  ;;  %vm367_vm14 = vweird.f32 %v1620_v10  ;;  %v1622_v20 = vpop.eup %1621 }
 0x547   :  { %vm368_vm2 = vmor %vm366_vm15, %vm367_vm14  ;;  %v439_v24 = vadd.f32 1.0, %v1622_v20 }
 0x548   :  { %v363_v12 = vsub.f32 1.0, %v362_v11  ;;  %v1551_v11 = vld [vmem:[%s2187_s0 + $0x6] sm:$0x3] }
 0x549   :  { %1623 = vrcp.f32 %v439_v24  ;;  %v451_v30 = vand.u32 2147483648, %v439_v24  ;;  %vm445_vm5 = vweird.f32 %v439_v24  ;;  %v449_v36 = vand.u32 2147483647, %v439_v24 }
 0x54a   :  { %v364_v14 = vmul.f32 %v1620_v10, %v363_v12 }
 0x54b   :  { %v452_v41 = vor.u32 1.1754944e-38, %v451_v30  ;;  %vm450_vm7 = vcmp.eq.f32.partialorder %v449_v36, 8.507059e+37 }
 0x54c   :  { %v365_v15 = vadd.f32 %v1620_v10, %v364_v14 }
 0x54e   :  { %v369_v18 = vsel %vm368_vm2, %v1620_v10, %v365_v15 }
 0x54f   :  { %v374_v22 = vsel %vm371_vm3, %v373_v19, %v369_v18  ;;  %v1624_v25 = vpop.eup %1623 }
 0x550   :  { %v441_v26 = vmul.f32 %v1624_v25, %v439_v24  ;;  %vm446_vm4 = vweird.f32 %v1624_v25 }
 0x551   :  { %vm447_vm6 = vmor %vm445_vm5, %vm446_vm4 }
 0x552   :  { %v442_v27 = vsub.f32 1.0, %v441_v26 }
 0x554   :  { %v443_v28 = vmul.f32 %v1624_v25, %v442_v27 }
 0x556   :  { %v444_v29 = vadd.f32 %v1624_v25, %v443_v28 }
 0x558   :  { %v448_v37 = vsel %vm447_vm6, %v1624_v25, %v444_v29 }
 0x559   :  { %v453_v42 = vsel %vm450_vm7, %v452_v41, %v448_v37 }
 0x58c   :  { %v384_v21 = vpop.permute.xlu2 %383 }
 0x58d   :  { %v386_v23 = vmul.f32 %v384_v21, %v374_v22 }
 0x58f   :  { %388 = vrot.lane.b32.xlu0 %v386_v23, %s1776_s29 }
 0x594   :  { %v379_v45 = vpop.permute.xlu2 %378 }
 0x595   :  { %v381_v46 = vmul.f32 %v379_v45, %v374_v22 }
 0x5ae   :  { %v463_v43 = vpop.permute.xlu1 %462 }
 0x5af   :  { %v465_v44 = vmul.f32 %v463_v43, %v453_v42 }
 0x5b1   :  { %467 = vrot.lane.b32.xlu2 %v465_v44, %s1776_s29 }
 0x5b6   :  { %v458_v50 = vpop.permute.xlu1 %457 }
 0x5b7   :  { %v460_v52 = vmul.f32 %v458_v50, %v453_v42 }
 0x601   :  { %v389_v48 = vpop.permute.xlu0 %388 }
 0x602   :  { %v391_v49 = vadd.f32 %v389_v48, %v381_v46 }
 0x604   :  { %1625 = vtanh.f32 %v391_v49 }
 0x60a   :  { %v1626_v51 = vpop.eup %1625 }
 0x60b   :  { %v468_v53 = vpop.permute.xlu2 %467  ;;  %394 = vrot.lane.b32.xlu0 %v1626_v51, %s1775_s28 }
 0x60c   :  { %v470_v54 = vadd.f32 %v468_v53, %v460_v52 }
 0x60e   :  { %1627 = vtanh.f32 %v470_v54 }
 0x614   :  { %v1628_v55 = vpop.eup %1627 }
 0x615   :  { %473 = vrot.lane.b32.xlu1 %v1628_v55, %s1775_s28 }
 0x61d   :  { %404 = vrot.lane.b32.xlu1 %v391_v49, %s1777_s15 }
 0x67d   :  { %v395_v56 = vpop.permute.xlu0 %394 }
 0x67e   :  { %v397_v57 = vmul.f32 %v395_v56, %v374_v22 }
 0x680   :  { %399 = vrot.lane.b32.xlu2 %v397_v57, %s1776_s29 }
 0x687   :  { %v474_v58 = vpop.permute.xlu1 %473 }
 0x688   :  { %v476_v59 = vmul.f32 %v474_v58, %v453_v42  ;;  %483 = vrot.lane.b32.xlu2 %v470_v54, %s1777_s15 }
 0x68a   :  { %478 = vrot.lane.b32.xlu0 %v476_v59, %s1776_s29 }
 0x68f   :  { %v405_v60 = vpop.permute.xlu1 %404 }
 0x690   :  { %407 = vst.msk [vmem:[#allocation3 + $0x2] sm:$0x3] %vm25_vm0, %v405_v60 }
 0x697   :  { %v488_v61 = vld [vmem:[#allocation3 + $0x2] sm:$0x3] }
 0x698   :  { %556 = vrot.lane.b32.xlu2 %v488_v61, %s1776_s29 }
 0x6da   :  { %v400_v62 = vpop.permute.xlu2 %399 }
 0x6db   :  { %402 = vst.msk [vmem:[#allocation2 + $0x2] sm:$0x3] %vm25_vm0, %v400_v62 }
 0x6e2   :  { %v484_v63 = vpop.permute.xlu2 %483  ;;  %v487_v3 = vld [vmem:[#allocation2 + $0x2] sm:$0x3] }
 0x6e3   :  { %486 = vst.msk [vmem:[#allocation3] sm:$0x3] %vm25_vm0, %v484_v63  ;;  %1548 = vmatmul.msk.f32.vlgmr.msrb.gmra.mxu3 %vm49_vm1, %v487_v3 }
 0x6e4   :  { %961 = vmatpush.msrb.mxu3 %v1814_v0 }
 0x6e6   :  { %962 = vmatpush.msrb.mxu3 %v1819_v1 }
 0x6e8   :  { %963 = vmatpush.msrb.mxu3 %v1825_v2 }
 0x6ea   :  { %964 = vmatpush.msrb.mxu3 %v1836_v4  ;;  %v587_v16 = vld [vmem:[#allocation3] sm:$0x3] }
 0x6f2   :  { %v557_v56 = vpop.permute.xlu2 %556 }
 0x6fc   :  { %v479_v5 = vpop.permute.xlu0 %478 }
 0x6fd   :  { %481 = vst.msk [vmem:[#allocation2] sm:$0x3] %vm25_vm0, %v479_v5  ;;  %1549 = vmatmul.msk.f32.vlgmr.msra.gmra.mxu0 %vm49_vm1, %v479_v5 }
 0x6fe   :  { %1038 = vmatpush.msra.mxu0 %v1865_v33 }
 0x700   :  { %1039 = vmatpush.msra.mxu0 %v1892_v38 }
 0x702   :  { %1040 = vmatpush.msra.mxu0 %v1897_v39 }
 0x704   :  { %v586_v6 = vld [vmem:[#allocation2] sm:$0x3]  ;;  %1041 = vmatpush.msra.mxu0 %v1904_v40 }
 0x705   :  { %1552 = vmatmul.msk.f32.vlgmr.msra.gmra.mxu1 %vm49_vm1, %v586_v6 }
 0x706   :  { %1060 = vmatpush.msra.mxu1 %v1854_v31 }
 0x708   :  { %1061 = vmatpush.msra.mxu1 %v1859_v32 }
 0x70a   :  { %1062 = vmatpush.msra.mxu1 %v1870_v34 }
 0x70c   :  { %1063 = vmatpush.msra.mxu1 %v1879_v35 }
 0x766   :  { %v509_v7 = vpop.f32.mrf.mxu3 }
 0x77a   :  { %v531_v8 = vpop.f32.mrf.mxu0 }
 0x77b   :  { %v532_v9 = vadd.f32 %v531_v8, %v509_v7 }
 0x77d   :  { %v534_v10 = vadd.f32 %v1942_v47, %v532_v9 }
 0x77f   :  { %1629 = vtanh.f32 %v534_v10  ;;  %v1550_v17 = vmul.f32 -1.442695, %v534_v10 }
 0x782   :  { %v610_v12 = vpop.f32.mrf.mxu1 }
 0x783   :  { %v613_v13 = vadd.f32 %v1551_v11, %v610_v12 }
 0x785   :  { %v1630_v14 = vpop.eup %1629  ;;  %1631 = vtanh.f32 %v613_v13  ;;  %v1553_v18 = vmul.f32 -1.442695, %v613_v13 }
 0x786   :  { %561 = vrot.lane.b32.xlu0 %v1630_v14, %s1775_s28  ;;  %1633 = vpow2.f32 %v1550_v17 }
 0x787   :  { %1635 = vpow2.f32 %v1553_v18 }
 0x78b   :  { %v1632_v15 = vpop.eup %1631 }
 0x78c   :  { %640 = vrot.lane.b32.xlu1 %v1632_v15, %s1775_s28  ;;  %v1634_v19 = vpop.eup %1633 }
 0x78d   :  { %v538_v20 = vadd.f32 1.0, %v1634_v19  ;;  %v1636_v21 = vpop.eup %1635 }
 0x78e   :  { %v617_v22 = vadd.f32 1.0, %v1636_v21 }
 0x78f   :  { %1637 = vrcp.f32 %v538_v20  ;;  %v550_v36 = vand.u32 2147483648, %v538_v20  ;;  %vm544_vm9 = vweird.f32 %v538_v20  ;;  %v548_v37 = vand.u32 2147483647, %v538_v20 }
 0x790   :  { %1639 = vrcp.f32 %v617_v22  ;;  %v629_v48 = vand.u32 2147483648, %v617_v22  ;;  %vm623_vm13 = vweird.f32 %v617_v22  ;;  %v627_v50 = vand.u32 2147483647, %v617_v22 }
 0x791   :  { %v551_v43 = vor.u32 1.1754944e-38, %v550_v36  ;;  %vm549_vm11 = vcmp.eq.f32.partialorder %v548_v37, 8.507059e+37 }
 0x792   :  { %v630_v52 = vor.u32 1.1754944e-38, %v629_v48  ;;  %vm628_vm15 = vcmp.eq.f32.partialorder %v627_v50, 8.507059e+37 }
 0x794   :  { %635 = vrot.lane.b32.xlu1 %v587_v16, %s1776_s29 }
 0x795   :  { %v1638_v23 = vpop.eup %1637 }
 0x796   :  { %v540_v24 = vmul.f32 %v1638_v23, %v538_v20  ;;  %v1640_v25 = vpop.eup %1639  ;;  %vm545_vm8 = vweird.f32 %v1638_v23 }
 0x797   :  { %v619_v27 = vmul.f32 %v1640_v25, %v617_v22  ;;  %vm546_vm10 = vmor %vm544_vm9, %vm545_vm8  ;;  %vm624_vm12 = vweird.f32 %v1640_v25 }
 0x798   :  { %v541_v26 = vsub.f32 1.0, %v540_v24  ;;  %vm625_vm14 = vmor %vm623_vm13, %vm624_vm12 }
 0x799   :  { %v620_v29 = vsub.f32 1.0, %v619_v27 }
 0x79a   :  { %v542_v28 = vmul.f32 %v1638_v23, %v541_v26 }
 0x79b   :  { %v621_v41 = vmul.f32 %v1640_v25, %v620_v29 }
 0x79c   :  { %v543_v30 = vadd.f32 %v1638_v23, %v542_v28 }
 0x79d   :  { %v622_v44 = vadd.f32 %v1640_v25, %v621_v41 }
 0x79e   :  { %v547_v42 = vsel %vm546_vm10, %v1638_v23, %v543_v30 }
 0x79f   :  { %v552_v46 = vsel %vm549_vm11, %v551_v43, %v547_v42  ;;  %v626_v51 = vsel %vm625_vm14, %v1640_v25, %v622_v44 }
 0x7a0   :  { %v631_v54 = vsel %vm628_vm15, %v630_v52, %v626_v51  ;;  %v559_v62 = vmul.f32 %v557_v56, %v552_v46 }
 0x7f8   :  { %v562_v45 = vpop.permute.xlu0 %561 }
 0x7f9   :  { %v564_v49 = vmul.f32 %v562_v45, %v552_v46 }
 0x7fb   :  { %566 = vrot.lane.b32.xlu0 %v564_v49, %s1776_s29 }
 0x7fe   :  { %v641_v53 = vpop.permute.xlu1 %640 }
 0x7ff   :  { %v643_v55 = vmul.f32 %v641_v53, %v631_v54 }
 0x801   :  { %645 = vrot.lane.b32.xlu2 %v643_v55, %s1776_s29 }
 0x806   :  { %v636_v57 = vpop.permute.xlu1 %635 }
 0x807   :  { %v638_v58 = vmul.f32 %v636_v57, %v631_v54 }
 0x85b   :  { %v646_v59 = vpop.permute.xlu2 %645 }
 0x85c   :  { %v648_v60 = vadd.f32 %v646_v59, %v638_v58 }
 0x85e   :  { %1641 = vtanh.f32 %v648_v60 }
 0x864   :  { %v1642_v61 = vpop.eup %1641 }
 0x865   :  { %651 = vrot.lane.b32.xlu1 %v1642_v61, %s1775_s28 }
 0x86d   :  { %v567_v63 = vpop.permute.xlu0 %566 }
 0x86e   :  { %v569_v3 = vadd.f32 %v567_v63, %v559_v62 }
 0x870   :  { %1643 = vtanh.f32 %v569_v3  ;;  %582 = vrot.lane.b32.xlu1 %v569_v3, %s1777_s15 }
 0x876   :  { %v1644_v5 = vpop.eup %1643 }
 0x877   :  { %572 = vrot.lane.b32.xlu0 %v1644_v5, %s1775_s28 }
 0x8d7   :  { %v652_v6 = vpop.permute.xlu1 %651 }
 0x8d8   :  { %v654_v7 = vmul.f32 %v652_v6, %v631_v54 }
 0x8da   :  { %656 = vrot.lane.b32.xlu0 %v654_v7, %s1776_s29 }
 0x8e2   :  { %v583_v8 = vpop.permute.xlu1 %582 }
 0x8e3   :  { %585 = vst.msk [vmem:[#allocation3 + $0x2] sm:$0x3] %vm25_vm0, %v583_v8 }
 0x8e9   :  { %v573_v9 = vpop.permute.xlu0 %572 }
 0x8ea   :  { %v575_v10 = vmul.f32 %v573_v9, %v552_v46  ;;  %v666_v11 = vld [vmem:[#allocation3 + $0x2] sm:$0x3] }
 0x8ec   :  { %577 = vrot.lane.b32.xlu2 %v575_v10, %s1776_s29 }
 0x8f4   :  { %661 = vrot.lane.b32.xlu2 %v648_v60, %s1777_s15 }
 0x8fc   :  { %734 = vrot.lane.b32.xlu2 %v666_v11, %s1776_s29 }
 0x946   :  { %v578_v12 = vpop.permute.xlu2 %577 }
 0x947   :  { %580 = vst.msk [vmem:[#allocation2 + $0x2] sm:$0x3] %vm25_vm0, %v578_v12 }
 0x94c   :  { %v657_v13 = vpop.permute.xlu0 %656 }
 0x94d   :  { %659 = vst.msk [vmem:[#allocation2] sm:$0x3] %vm25_vm0, %v657_v13  ;;  %1555 = vmatmul.msk.f32.vlgmr.msra.gmra.mxu3 %vm49_vm1, %v657_v13 }
 0x94e   :  { %v662_v14 = vpop.permute.xlu2 %661  ;;  %v665_v15 = vld [vmem:[#allocation2 + $0x2] sm:$0x3]  ;;  %1216 = vmatpush.msra.mxu3 %v1865_v33 }
 0x94f   :  { %664 = vst.msk [vmem:[#allocation3] sm:$0x3] %vm25_vm0, %v662_v14  ;;  %1554 = vmatmul.msk.f32.vlgmr.msra.gmra.mxu2 %vm49_vm1, %v665_v15 }
 0x950   :  { %1139 = vmatpush.msra.mxu2 %v1814_v0  ;;  %1217 = vmatpush.msra.mxu3 %v1892_v38  ;;  %v1557_v0 = vld [vmem:[%s2187_s0 + $0x8] sm:$0x3] }
 0x952   :  { %1140 = vmatpush.msra.mxu2 %v1819_v1  ;;  %1218 = vmatpush.msra.mxu3 %v1897_v39 }
 0x954   :  { %v764_v16 = vld [vmem:[#allocation2] sm:$0x3]  ;;  %1141 = vmatpush.msra.mxu2 %v1825_v2  ;;  %1219 = vmatpush.msra.mxu3 %v1904_v40 }
 0x955   :  { %1558 = vmatmul.msk.f32.vlgmr.msrb.gmra.mxu0 %vm49_vm1, %v764_v16 }
 0x956   :  { %1142 = vmatpush.msra.mxu2 %v1836_v4  ;;  %1238 = vmatpush.msrb.mxu0 %v1854_v31  ;;  %v765_v22 = vld [vmem:[#allocation3] sm:$0x3]  ;;  %v735_v62 = vpop.permute.xlu2 %734 }
 0x958   :  { %1239 = vmatpush.msrb.mxu0 %v1859_v32 }
 0x95a   :  { %1240 = vmatpush.msrb.mxu0 %v1870_v34 }
 0x95c   :  { %1241 = vmatpush.msrb.mxu0 %v1879_v35 }
 0x9d0   :  { %v709_v1 = vpop.f32.mrf.mxu3 }
 0x9d2   :  { %v687_v2 = vpop.f32.mrf.mxu2  ;;  %v788_v17 = vpop.f32.mrf.mxu0 }
 0x9d3   :  { %v710_v18 = vadd.f32 %v709_v1, %v687_v2  ;;  %v791_v19 = vadd.f32 %v1557_v0, %v788_v17 }
 0x9d5   :  { %v712_v20 = vadd.f32 %v1942_v47, %v710_v18  ;;  %1645 = vtanh.f32 %v791_v19  ;;  %v1559_v23 = vmul.f32 -1.442695, %v791_v19 }
 0x9d7   :  { %1647 = vtanh.f32 %v712_v20  ;;  %v1556_v24 = vmul.f32 -1.442695, %v712_v20 }
 0x9d8   :  { %1649 = vpow2.f32 %v1559_v23 }
 0x9d9   :  { %1651 = vpow2.f32 %v1556_v24 }
 0x9db   :  { %v1646_v4 = vpop.eup %1645 }
 0x9dc   :  { %818 = vrot.lane.b32.xlu1 %v1646_v4, %s1775_s28  ;;  %v1563_v4 = vld [vmem:[%s2187_s0 + $0xa] sm:$0x3] }
 0x9dd   :  { %v1648_v21 = vpop.eup %1647 }
 0x9de   :  { %739 = vrot.lane.b32.xlu0 %v1648_v21, %s1775_s28  ;;  %v1650_v25 = vpop.eup %1649 }
 0x9df   :  { %v1652_v26 = vpop.eup %1651  ;;  %v795_v27 = vadd.f32 1.0, %v1650_v25 }
 0x9e0   :  { %v716_v28 = vadd.f32 1.0, %v1652_v26 }
 0x9e1   :  { %1653 = vrcp.f32 %v795_v27  ;;  %v807_v46 = vand.u32 2147483648, %v795_v27  ;;  %vm801_vm3 = vweird.f32 %v795_v27  ;;  %v805_v48 = vand.u32 2147483647, %v795_v27 }
 0x9e2   :  { %1655 = vrcp.f32 %v716_v28  ;;  %v728_v50 = vand.u32 2147483648, %v716_v28  ;;  %vm722_vm6 = vweird.f32 %v716_v28  ;;  %v726_v52 = vand.u32 2147483647, %v716_v28 }
 0x9e3   :  { %v808_v53 = vor.u32 1.1754944e-38, %v807_v46  ;;  %vm806_vm8 = vcmp.eq.f32.partialorder %v805_v48, 8.507059e+37 }
 0x9e4   :  { %813 = vrot.lane.b32.xlu1 %v765_v22, %s1776_s29  ;;  %v729_v57 = vor.u32 1.1754944e-38, %v728_v50  ;;  %vm727_vm9 = vcmp.eq.f32.partialorder %v726_v52, 8.507059e+37 }
 0x9e7   :  { %v1654_v29 = vpop.eup %1653 }
 0x9e8   :  { %v1656_v30 = vpop.eup %1655  ;;  %v797_v36 = vmul.f32 %v1654_v29, %v795_v27  ;;  %vm802_vm2 = vweird.f32 %v1654_v29 }
 0x9e9   :  { %v718_v37 = vmul.f32 %v1656_v30, %v716_v28  ;;  %vm723_vm4 = vweird.f32 %v1656_v30  ;;  %vm803_vm5 = vmor %vm801_vm3, %vm802_vm2 }
 0x9ea   :  { %v798_v41 = vsub.f32 1.0, %v797_v36  ;;  %vm724_vm7 = vmor %vm722_vm6, %vm723_vm4 }
 0x9eb   :  { %v719_v42 = vsub.f32 1.0, %v718_v37 }
 0x9ec   :  { %v799_v43 = vmul.f32 %v1654_v29, %v798_v41 }
 0x9ed   :  { %v720_v44 = vmul.f32 %v1656_v30, %v719_v42 }
 0x9ee   :  { %v800_v45 = vadd.f32 %v1654_v29, %v799_v43 }
 0x9ef   :  { %v721_v49 = vadd.f32 %v1656_v30, %v720_v44 }
 0x9f0   :  { %v804_v51 = vsel %vm803_vm5, %v1654_v29, %v800_v45 }
 0x9f1   :  { %v725_v54 = vsel %vm724_vm7, %v1656_v30, %v721_v49  ;;  %v809_v55 = vsel %vm806_vm8, %v808_v53, %v804_v51 }
 0x9f2   :  { %v730_v60 = vsel %vm727_vm9, %v729_v57, %v725_v54 }
 0x9f3   :  { %v737_v8 = vmul.f32 %v735_v62, %v730_v60 }
 0xa4e   :  { %v819_v56 = vpop.permute.xlu1 %818 }
 0xa4f   :  { %v821_v58 = vmul.f32 %v819_v56, %v809_v55 }
 0xa50   :  { %v740_v59 = vpop.permute.xlu0 %739 }
 0xa51   :  { %v742_v61 = vmul.f32 %v740_v59, %v730_v60  ;;  %823 = vrot.lane.b32.xlu2 %v821_v58, %s1776_s29 }
 0xa53   :  { %744 = vrot.lane.b32.xlu0 %v742_v61, %s1776_s29 }
 0xa56   :  { %v814_v63 = vpop.permute.xlu1 %813 }
 0xa57   :  { %v816_v3 = vmul.f32 %v814_v63, %v809_v55 }
 0xaab   :  { %v824_v5 = vpop.permute.xlu2 %823 }
 0xaac   :  { %v826_v6 = vadd.f32 %v824_v5, %v816_v3 }
 0xaae   :  { %1657 = vtanh.f32 %v826_v6 }
 0xab4   :  { %v1658_v7 = vpop.eup %1657 }
 0xab5   :  { %829 = vrot.lane.b32.xlu1 %v1658_v7, %s1775_s28 }
 0xac5   :  { %v745_v9 = vpop.permute.xlu0 %744 }
 0xac6   :  { %v747_v10 = vadd.f32 %v745_v9, %v737_v8 }
 0xac8   :  { %1659 = vtanh.f32 %v747_v10  ;;  %760 = vrot.lane.b32.xlu1 %v747_v10, %s1777_s15 }
 0xace   :  { %v1660_v11 = vpop.eup %1659 }
 0xacf   :  { %750 = vrot.lane.b32.xlu0 %v1660_v11, %s1775_s28 }
 0xb27   :  { %v830_v12 = vpop.permute.xlu1 %829 }
 0xb28   :  { %v832_v13 = vmul.f32 %v830_v12, %v809_v55 }
 0xb2a   :  { %834 = vrot.lane.b32.xlu0 %v832_v13, %s1776_s29 }
 0xb3a   :  { %v761_v14 = vpop.permute.xlu1 %760 }
 0xb3b   :  { %763 = vst.msk [vmem:[#allocation3 + $0x2] sm:$0x3] %vm25_vm0, %v761_v14 }
 0xb41   :  { %v751_v15 = vpop.permute.xlu0 %750 }
 0xb42   :  { %v753_v16 = vmul.f32 %v751_v15, %v730_v60  ;;  %v844_v0 = vld [vmem:[#allocation3 + $0x2] sm:$0x3] }
 0xb44   :  { %755 = vrot.lane.b32.xlu2 %v753_v16, %s1776_s29 }
 0xb4c   :  { %839 = vrot.lane.b32.xlu2 %v826_v6, %s1777_s15 }
 0xb54   :  { %912 = vrot.lane.b32.xlu2 %v844_v0, %s1776_s29 }
 0xb9c   :  { %v835_v1 = vpop.permute.xlu0 %834 }
 0xb9d   :  { %837 = vst.msk [vmem:[#allocation2] sm:$0x3] %vm25_vm0, %v835_v1  ;;  %1561 = vmatmul.msk.f32.vlgmr.msrb.gmra.mxu2 %vm49_vm1, %v835_v1 }
 0xb9e   :  { %v756_v2 = vpop.permute.xlu2 %755  ;;  %1394 = vmatpush.msrb.mxu2 %v1865_v33  ;;  %v1717_v33 = vld [vmem:[%s2189_s2 + $0x18] sm:$0xff] }
 0xb9f   :  { %758 = vst.msk [vmem:[#allocation2 + $0x2] sm:$0x3] %vm25_vm0, %v756_v2 }
 0xba0   :  { %1395 = vmatpush.msrb.mxu2 %v1892_v38  ;;  %v1718_v38 = vld [vmem:[%s2189_s2 + $0x10] sm:$0xff] }
 0xba2   :  { %1396 = vmatpush.msrb.mxu2 %v1897_v39  ;;  %v1720_v39 = vld [vmem:[%s2189_s2] sm:$0xff] }
 0xba4   :  { %v942_v17 = vld [vmem:[#allocation2] sm:$0x3]  ;;  %1397 = vmatpush.msrb.mxu2 %v1904_v40 }
 0xba5   :  { %1564 = vmatmul.msk.f32.vlgmr.msrb.gmra.mxu3 %vm49_vm1, %v942_v17 }
 0xba6   :  { %v840_v18 = vpop.permute.xlu2 %839  ;;  %v843_v19 = vld [vmem:[#allocation2 + $0x2] sm:$0x3]  ;;  %1416 = vmatpush.msrb.mxu3 %v1854_v31  ;;  %v1719_v31 = vld [vmem:[%s2189_s2 + $0x8] sm:$0xff] }
 0xba7   :  { %842 = vst.msk [vmem:[#allocation3] sm:$0x3] %vm25_vm0, %v840_v18  ;;  %1560 = vmatmul.msk.f32.vlgmr.msrb.gmra.mxu1 %vm49_vm1, %v843_v19 }
 0xba8   :  { %1317 = vmatpush.msrb.mxu1 %v1717_v33  ;;  %1417 = vmatpush.msrb.mxu3 %v1859_v32 }
 0xbaa   :  { %1318 = vmatpush.msrb.mxu1 %v1718_v38  ;;  %1418 = vmatpush.msrb.mxu3 %v1870_v34 }
 0xbac   :  { %1319 = vmatpush.msrb.mxu1 %v1719_v31  ;;  %1419 = vmatpush.msrb.mxu3 %v1879_v35 }
 0xbae   :  { %1320 = vmatpush.msrb.mxu1 %v1720_v39  ;;  %v943_v24 = vld [vmem:[#allocation3] sm:$0x3]  ;;  %v913_v63 = vpop.permute.xlu2 %912  ;;  %v2117_v39 = vld [vmem:[%s2190_s3 + $0x1] ss:$0 sm:$0xff] }
 0xc20   :  { %v887_v32 = vpop.f32.mrf.mxu2 }
 0xc24   :  { %v865_v40 = vpop.f32.mrf.mxu1 }
 0xc25   :  { %v888_v20 = vadd.f32 %v887_v32, %v865_v40  ;;  %v1569_v40 = vld [vmem:[%s2187_s0 + $0xc] sm:$0x3] }
 0xc27   :  { %v890_v34 = vadd.f32 %v1942_v47, %v888_v20 }
 0xc28   :  { %v966_v21 = vpop.f32.mrf.mxu3 }
 0xc29   :  { %1661 = vtanh.f32 %v890_v34  ;;  %v969_v22 = vadd.f32 %v1563_v4, %v966_v21  ;;  %v1562_v25 = vmul.f32 -1.442695, %v890_v34 }
 0xc2b   :  { %1663 = vtanh.f32 %v969_v22  ;;  %v1565_v26 = vmul.f32 -1.442695, %v969_v22 }
 0xc2c   :  { %1665 = vpow2.f32 %v1562_v25 }
 0xc2d   :  { %1667 = vpow2.f32 %v1565_v26 }
 0xc2f   :  { %v1662_v23 = vpop.eup %1661 }
 0xc30   :  { %917 = vrot.lane.b32.xlu0 %v1662_v23, %s1775_s28 }
 0xc31   :  { %v1664_v35 = vpop.eup %1663 }
 0xc32   :  { %996 = vrot.lane.b32.xlu1 %v1664_v35, %s1775_s28  ;;  %v1666_v27 = vpop.eup %1665 }
 0xc33   :  { %v1668_v28 = vpop.eup %1667  ;;  %v894_v47 = vadd.f32 1.0, %v1666_v27 }
 0xc34   :  { %v973_v29 = vadd.f32 1.0, %v1668_v28 }
 0xc35   :  { %1669 = vrcp.f32 %v894_v47  ;;  %v906_v48 = vand.u32 2147483648, %v894_v47  ;;  %vm900_vm11 = vweird.f32 %v894_v47  ;;  %v904_v49 = vand.u32 2147483647, %v894_v47 }
 0xc36   :  { %1671 = vrcp.f32 %v973_v29  ;;  %v985_v52 = vand.u32 2147483648, %v973_v29  ;;  %vm979_vm14 = vweird.f32 %v973_v29  ;;  %v983_v54 = vand.u32 2147483647, %v973_v29 }
 0xc37   :  { %v907_v53 = vor.u32 1.1754944e-38, %v906_v48  ;;  %vm905_vm15 = vcmp.eq.f32.partialorder %v904_v49, 8.507059e+37 }
 0xc38   :  { %v986_v59 = vor.u32 1.1754944e-38, %v985_v52  ;;  %vm984_vm3 = vcmp.eq.f32.partialorder %v983_v54, 8.507059e+37 }
 0xc3a   :  { %991 = vrot.lane.b32.xlu1 %v943_v24, %s1776_s29 }
 0xc3b   :  { %v1670_v30 = vpop.eup %1669 }
 0xc3c   :  { %v1672_v36 = vpop.eup %1671  ;;  %v896_v37 = vmul.f32 %v1670_v30, %v894_v47  ;;  %vm901_vm10 = vweird.f32 %v1670_v30 }
 0xc3d   :  { %v975_v41 = vmul.f32 %v1672_v36, %v973_v29  ;;  %vm902_vm12 = vmor %vm900_vm11, %vm901_vm10  ;;  %vm980_vm13 = vweird.f32 %v1672_v36 }
 0xc3e   :  { %v897_v42 = vsub.f32 1.0, %v896_v37  ;;  %vm981_vm2 = vmor %vm979_vm14, %vm980_vm13 }
 0xc3f   :  { %v976_v43 = vsub.f32 1.0, %v975_v41 }
 0xc40   :  { %v898_v44 = vmul.f32 %v1670_v30, %v897_v42 }
 0xc41   :  { %v977_v45 = vmul.f32 %v1672_v36, %v976_v43 }
 0xc42   :  { %v899_v46 = vadd.f32 %v1670_v30, %v898_v44 }
 0xc43   :  { %v978_v50 = vadd.f32 %v1672_v36, %v977_v45 }
 0xc44   :  { %v903_v51 = vsel %vm902_vm12, %v1670_v30, %v899_v46 }
 0xc45   :  { %v908_v56 = vsel %vm905_vm15, %v907_v53, %v903_v51  ;;  %v982_v57 = vsel %vm981_vm2, %v1672_v36, %v978_v50 }
 0xc46   :  { %v987_v60 = vsel %vm984_vm3, %v986_v59, %v982_v57  ;;  %v915_v9 = vmul.f32 %v913_v63, %v908_v56 }
 0xca2   :  { %v918_v55 = vpop.permute.xlu0 %917 }
 0xca3   :  { %v920_v58 = vmul.f32 %v918_v55, %v908_v56 }
 0xca4   :  { %v997_v61 = vpop.permute.xlu1 %996 }
 0xca5   :  { %922 = vrot.lane.b32.xlu0 %v920_v58, %s1776_s29  ;;  %v999_v62 = vmul.f32 %v997_v61, %v987_v60 }
 0xca7   :  { %1001 = vrot.lane.b32.xlu2 %v999_v62, %s1776_s29 }
 0xcac   :  { %v992_v3 = vpop.permute.xlu1 %991 }
 0xcad   :  { %v994_v5 = vmul.f32 %v992_v3, %v987_v60 }
 0xd01   :  { %v1002_v6 = vpop.permute.xlu2 %1001 }
 0xd02   :  { %v1004_v7 = vadd.f32 %v1002_v6, %v994_v5 }
 0xd04   :  { %1673 = vtanh.f32 %v1004_v7 }
 0xd0a   :  { %v1674_v8 = vpop.eup %1673 }
 0xd0b   :  { %1007 = vrot.lane.b32.xlu1 %v1674_v8, %s1775_s28 }
 0xd17   :  { %v923_v10 = vpop.permute.xlu0 %922 }
 0xd18   :  { %v925_v11 = vadd.f32 %v923_v10, %v915_v9 }
 0xd1a   :  { %1675 = vtanh.f32 %v925_v11  ;;  %938 = vrot.lane.b32.xlu1 %v925_v11, %s1777_s15 }
 0xd20   :  { %v1676_v12 = vpop.eup %1675 }
 0xd21   :  { %928 = vrot.lane.b32.xlu0 %v1676_v12, %s1775_s28 }
 0xd7d   :  { %v1008_v13 = vpop.permute.xlu1 %1007 }
 0xd7e   :  { %v1010_v14 = vmul.f32 %v1008_v13, %v987_v60 }
 0xd80   :  { %1012 = vrot.lane.b32.xlu0 %v1010_v14, %s1776_s29 }
 0xd88   :  { %1017 = vrot.lane.b32.xlu0 %v1004_v7, %s1777_s15 }
 0xd8c   :  { %v939_v15 = vpop.permute.xlu1 %938 }
 0xd8d   :  { %941 = vst.msk [vmem:[#allocation3 + $0x2] sm:$0x3] %vm25_vm0, %v939_v15 }
 0xd93   :  { %v929_v16 = vpop.permute.xlu0 %928 }
 0xd94   :  { %v931_v0 = vmul.f32 %v929_v16, %v908_v56  ;;  %v1022_v22 = vld [vmem:[#allocation3 + $0x2] sm:$0x3] }
 0xd96   :  { %933 = vrot.lane.b32.xlu2 %v931_v0, %s1776_s29 }
 0xdf0   :  { %v934_v1 = vpop.permute.xlu2 %933 }
 0xdf1   :  { %936 = vst.msk [vmem:[#allocation2 + $0x2] sm:$0x3] %vm25_vm0, %v934_v1 }
 0xdf2   :  { %v1013_v2 = vpop.permute.xlu0 %1012 }
 0xdf3   :  { %1015 = vst.msk [vmem:[#allocation2] sm:$0x3] %vm25_vm0, %v1013_v2  ;;  %1567 = vmatmul.msk.f32.vlgmr.msra.gmra.mxu1 %vm49_vm1, %v1013_v2 }
 0xdf8   :  { %v1021_v17 = vld [vmem:[#allocation2 + $0x2] sm:$0x3] }
 0xdf9   :  { %1566 = vmatmul.msk.f32.vlgmr.msra.gmra.mxu0 %vm49_vm1, %v1021_v17 }
 0xdfa   :  { %v1018_v18 = vpop.permute.xlu0 %1017  ;;  %v1120_v19 = vld [vmem:[#allocation2] sm:$0x3] }
 0xdfb   :  { %1020 = vst.msk [vmem:[#allocation3] sm:$0x3] %vm25_vm0, %v1018_v18  ;;  %1570 = vmatmul.msk.f32.vlgmr.msra.gmra.mxu2 %vm49_vm1, %v1120_v19 }
 0xe02   :  { %v1121_v23 = vld [vmem:[#allocation3] sm:$0x3] }
 0xe70   :  { %v1065_v33 = vpop.f32.mrf.mxu1 }
 0xe76   :  { %v1043_v38 = vpop.f32.mrf.mxu0 }
 0xe77   :  { %v1066_v31 = vadd.f32 %v1065_v33, %v1043_v38 }
 0xe79   :  { %v1068_v32 = vadd.f32 %v2117_v39, %v1066_v31 }
 0xe7b   :  { %1677 = vtanh.f32 %v1068_v32  ;;  %v1568_v35 = vmul.f32 -1.442695, %v1068_v32  ;;  %v1575_v32 = vld [vmem:[%s2187_s0 + $0xe] sm:$0x3]  ;;  %s1778_s0 = smov [#allocation6]  }
 0xe7c   :  { %s1506_s22 = sshll.u32 %s1778_s0, 4  ;;  %s1507_s22 = int_to_ptr.vmem [resolvable:$true] %s1506_s22 }
 0xe7e   :  { %v1144_v20 = vpop.f32.mrf.mxu2 }
 0xe7f   :  { %v1147_v4 = vadd.f32 %v1569_v40, %v1144_v20 }
 0xe81   :  { %v1678_v34 = vpop.eup %1677  ;;  %1679 = vtanh.f32 %v1147_v4  ;;  %v1571_v47 = vmul.f32 -1.442695, %v1147_v4 }
 0xe82   :  { %1095 = vrot.lane.b32.xlu2 %v1678_v34, %s1775_s28  ;;  %1681 = vpow2.f32 %v1568_v35 }
 0xe87   :  { %v1680_v21 = vpop.eup %1679 }
 0xe88   :  { %1174 = vrot.lane.b32.xlu1 %v1680_v21, %s1775_s28  ;;  %v1682_v24 = vpop.eup %1681 }
 0xe89   :  { %v1072_v25 = vadd.f32 1.0, %v1682_v24 }
 0xe8a   :  { %1090 = vrot.lane.b32.xlu2 %v1022_v22, %s1776_s29 }
 0xe8b   :  { %1683 = vrcp.f32 %v1072_v25  ;;  %v1084_v36 = vand.u32 2147483648, %v1072_v25  ;;  %vm1078_vm5 = vweird.f32 %v1072_v25  ;;  %v1082_v37 = vand.u32 2147483647, %v1072_v25 }
 0xe8c   :  { %1685 = vpow2.f32 %v1571_v47 }
 0xe8d   :  { %v1085_v43 = vor.u32 1.1754944e-38, %v1084_v36  ;;  %vm1083_vm7 = vcmp.eq.f32.partialorder %v1082_v37, 8.507059e+37 }
 0xe90   :  { %1169 = vrot.lane.b32.xlu1 %v1121_v23, %s1776_s29 }
 0xe91   :  { %v1684_v26 = vpop.eup %1683 }
 0xe92   :  { %v1074_v27 = vmul.f32 %v1684_v26, %v1072_v25  ;;  %vm1079_vm4 = vweird.f32 %v1684_v26  ;;  %v1686_v41 = vpop.eup %1685 }
 0xe93   :  { %vm1080_vm6 = vmor %vm1078_vm5, %vm1079_vm4  ;;  %v1151_v44 = vadd.f32 1.0, %v1686_v41 }
 0xe94   :  { %v1075_v28 = vsub.f32 1.0, %v1074_v27 }
 0xe95   :  { %1687 = vrcp.f32 %v1151_v44  ;;  %v1163_v54 = vand.u32 2147483648, %v1151_v44  ;;  %vm1157_vm9 = vweird.f32 %v1151_v44  ;;  %v1161_v55 = vand.u32 2147483647, %v1151_v44 }
 0xe96   :  { %v1076_v29 = vmul.f32 %v1684_v26, %v1075_v28 }
 0xe97   :  { %v1164_v57 = vor.u32 1.1754944e-38, %v1163_v54  ;;  %vm1162_vm11 = vcmp.eq.f32.partialorder %v1161_v55, 8.507059e+37 }
 0xe98   :  { %v1077_v30 = vadd.f32 %v1684_v26, %v1076_v29 }
 0xe9a   :  { %v1081_v42 = vsel %vm1080_vm6, %v1684_v26, %v1077_v30 }
 0xe9b   :  { %v1086_v46 = vsel %vm1083_vm7, %v1085_v43, %v1081_v42  ;;  %v1688_v49 = vpop.eup %1687 }
 0xe9c   :  { %v1153_v50 = vmul.f32 %v1688_v49, %v1151_v44  ;;  %vm1158_vm8 = vweird.f32 %v1688_v49 }
 0xe9d   :  { %vm1159_vm10 = vmor %vm1157_vm9, %vm1158_vm8 }
 0xe9e   :  { %v1154_v51 = vsub.f32 1.0, %v1153_v50 }
 0xea0   :  { %v1155_v52 = vmul.f32 %v1688_v49, %v1154_v51 }
 0xea2   :  { %v1156_v53 = vadd.f32 %v1688_v49, %v1155_v52 }
 0xea4   :  { %v1160_v56 = vsel %vm1159_vm10, %v1688_v49, %v1156_v53 }
 0xea5   :  { %v1165_v58 = vsel %vm1162_vm11, %v1164_v57, %v1160_v56 }
 0xedc   :  { %v1096_v45 = vpop.permute.xlu2 %1095 }
 0xedd   :  { %v1098_v48 = vmul.f32 %v1096_v45, %v1086_v46 }
 0xedf   :  { %1100 = vrot.lane.b32.xlu0 %v1098_v48, %s1776_s29 }
 0xee4   :  { %v1091_v61 = vpop.permute.xlu2 %1090 }
 0xee5   :  { %v1093_v62 = vmul.f32 %v1091_v61, %v1086_v46 }
 0xefa   :  { %v1175_v59 = vpop.permute.xlu1 %1174 }
 0xefb   :  { %v1177_v60 = vmul.f32 %v1175_v59, %v1165_v58 }
 0xefd   :  { %1179 = vrot.lane.b32.xlu2 %v1177_v60, %s1776_s29 }
 0xf02   :  { %v1170_v5 = vpop.permute.xlu1 %1169 }
 0xf03   :  { %v1172_v6 = vmul.f32 %v1170_v5, %v1165_v58 }
 0xf51   :  { %v1101_v63 = vpop.permute.xlu0 %1100 }
 0xf52   :  { %v1103_v3 = vadd.f32 %v1101_v63, %v1093_v62 }
 0xf54   :  { %1689 = vtanh.f32 %v1103_v3 }
 0xf57   :  { %v1180_v7 = vpop.permute.xlu2 %1179 }
 0xf58   :  { %v1182_v8 = vadd.f32 %v1180_v7, %v1172_v6 }
 0xf5a   :  { %v1690_v9 = vpop.eup %1689  ;;  %1691 = vtanh.f32 %v1182_v8 }
 0xf5b   :  { %1106 = vrot.lane.b32.xlu0 %v1690_v9, %s1775_s28 }
 0xf60   :  { %v1692_v10 = vpop.eup %1691 }
 0xf61   :  { %1185 = vrot.lane.b32.xlu1 %v1692_v10, %s1775_s28 }
 0xf69   :  { %1116 = vrot.lane.b32.xlu1 %v1103_v3, %s1777_s15 }
 0xfcd   :  { %v1107_v11 = vpop.permute.xlu0 %1106 }
 0xfce   :  { %v1109_v12 = vmul.f32 %v1107_v11, %v1086_v46 }
 0xfd0   :  { %1111 = vrot.lane.b32.xlu2 %v1109_v12, %s1776_s29 }
 0xfd3   :  { %v1186_v13 = vpop.permute.xlu1 %1185 }
 0xfd4   :  { %v1188_v14 = vmul.f32 %v1186_v13, %v1165_v58 }
 0xfd6   :  { %1190 = vrot.lane.b32.xlu0 %v1188_v14, %s1776_s29 }
 0xfd8   :  { %1195 = vrot.lane.b32.xlu2 %v1182_v8, %s1777_s15 }
 0xfdb   :  { %v1117_v15 = vpop.permute.xlu1 %1116 }
 0xfdc   :  { %1119 = vst.msk [vmem:[#allocation3 + $0x2] sm:$0x3] %vm25_vm0, %v1117_v15 }
 0xfe3   :  { %v1200_v16 = vld [vmem:[#allocation3 + $0x2] sm:$0x3] }
 0xfe4   :  { %1268 = vrot.lane.b32.xlu2 %v1200_v16, %s1776_s29 }
0x102a   :  { %v1112_v0 = vpop.permute.xlu2 %1111 }
0x102b   :  { %1114 = vst.msk [vmem:[#allocation2 + $0x2] sm:$0x3] %vm25_vm0, %v1112_v0 }
0x1032   :  { %v1196_v1 = vpop.permute.xlu2 %1195  ;;  %v1199_v2 = vld [vmem:[#allocation2 + $0x2] sm:$0x3] }
0x1033   :  { %1198 = vst.msk [vmem:[#allocation3] sm:$0x3] %vm25_vm0, %v1196_v1  ;;  %1572 = vmatmul.msk.f32.vlgmr.msra.gmra.mxu3 %vm49_vm1, %v1199_v2 }
0x103a   :  { %v1299_v21 = vld [vmem:[#allocation3] sm:$0x3] }
0x103e   :  { %v1269_v59 = vpop.permute.xlu2 %1268 }
0x1048   :  { %v1191_v17 = vpop.permute.xlu0 %1190 }
0x1049   :  { %1193 = vst.msk [vmem:[#allocation2] sm:$0x3] %vm25_vm0, %v1191_v17  ;;  %1573 = vmatmul.msk.f32.vlgmr.msrb.gmra.mxu0 %vm49_vm1, %v1191_v17 }
0x1050   :  { %v1298_v18 = vld [vmem:[#allocation2] sm:$0x3] }
0x1051   :  { %1576 = vmatmul.msk.f32.vlgmr.msrb.gmra.mxu1 %vm49_vm1, %v1298_v18 }
0x10b6   :  { %v1221_v19 = vpop.f32.mrf.mxu3 }
0x10c6   :  { %v1243_v33 = vpop.f32.mrf.mxu0 }
0x10c7   :  { %v1244_v38 = vadd.f32 %v1243_v33, %v1221_v19 }
0x10c9   :  { %v1246_v31 = vadd.f32 %v2117_v39, %v1244_v38 }
0x10cb   :  { %1693 = vtanh.f32 %v1246_v31  ;;  %v1574_v22 = vmul.f32 -1.442695, %v1246_v31 }
0x10ce   :  { %v1322_v40 = vpop.f32.mrf.mxu1 }
0x10cf   :  { %v1325_v20 = vadd.f32 %v1575_v32, %v1322_v40 }
0x10d1   :  { %v1694_v4 = vpop.eup %1693  ;;  %1695 = vtanh.f32 %v1325_v20  ;;  %v1577_v23 = vmul.f32 -1.442695, %v1325_v20 }
0x10d2   :  { %1273 = vrot.lane.b32.xlu0 %v1694_v4, %s1775_s28  ;;  %1697 = vpow2.f32 %v1574_v22 }
0x10d3   :  { %1699 = vpow2.f32 %v1577_v23 }
0x10d7   :  { %v1696_v34 = vpop.eup %1695 }
0x10d8   :  { %1352 = vrot.lane.b32.xlu1 %v1696_v34, %s1775_s28  ;;  %v1698_v35 = vpop.eup %1697 }
0x10d9   :  { %v1250_v24 = vadd.f32 1.0, %v1698_v35  ;;  %v1700_v25 = vpop.eup %1699 }
0x10da   :  { %v1329_v26 = vadd.f32 1.0, %v1700_v25 }
0x10db   :  { %1701 = vrcp.f32 %v1250_v24  ;;  %v1262_v42 = vand.u32 2147483648, %v1250_v24  ;;  %vm1256_vm13 = vweird.f32 %v1250_v24  ;;  %v1260_v43 = vand.u32 2147483647, %v1250_v24 }
0x10dc   :  { %1703 = vrcp.f32 %v1329_v26  ;;  %v1341_v51 = vand.u32 2147483648, %v1329_v26  ;;  %vm1335_vm3 = vweird.f32 %v1329_v26  ;;  %v1339_v53 = vand.u32 2147483647, %v1329_v26 }
0x10dd   :  { %v1263_v46 = vor.u32 1.1754944e-38, %v1262_v42  ;;  %vm1261_vm15 = vcmp.eq.f32.partialorder %v1260_v43, 8.507059e+37 }
0x10de   :  { %v1342_v55 = vor.u32 1.1754944e-38, %v1341_v51  ;;  %vm1340_vm5 = vcmp.eq.f32.partialorder %v1339_v53, 8.507059e+37 }
0x10e0   :  { %1347 = vrot.lane.b32.xlu1 %v1299_v21, %s1776_s29 }
0x10e1   :  { %v1702_v27 = vpop.eup %1701 }
0x10e2   :  { %v1252_v28 = vmul.f32 %v1702_v27, %v1250_v24  ;;  %v1704_v47 = vpop.eup %1703  ;;  %vm1257_vm12 = vweird.f32 %v1702_v27 }
0x10e3   :  { %v1331_v30 = vmul.f32 %v1704_v47, %v1329_v26  ;;  %vm1258_vm14 = vmor %vm1256_vm13, %vm1257_vm12  ;;  %vm1336_vm2 = vweird.f32 %v1704_v47 }
0x10e4   :  { %v1253_v29 = vsub.f32 1.0, %v1252_v28  ;;  %vm1337_vm4 = vmor %vm1335_vm3, %vm1336_vm2 }
0x10e5   :  { %v1332_v37 = vsub.f32 1.0, %v1331_v30 }
0x10e6   :  { %v1254_v36 = vmul.f32 %v1702_v27, %v1253_v29 }
0x10e7   :  { %v1333_v44 = vmul.f32 %v1704_v47, %v1332_v37 }
0x10e8   :  { %v1255_v41 = vadd.f32 %v1702_v27, %v1254_v36 }
0x10e9   :  { %v1334_v48 = vadd.f32 %v1704_v47, %v1333_v44 }
0x10ea   :  { %v1259_v45 = vsel %vm1258_vm14, %v1702_v27, %v1255_v41 }
0x10eb   :  { %v1264_v50 = vsel %vm1261_vm15, %v1263_v46, %v1259_v45  ;;  %v1338_v54 = vsel %vm1337_vm4, %v1704_v47, %v1334_v48 }
0x10ec   :  { %v1343_v56 = vsel %vm1340_vm5, %v1342_v55, %v1338_v54  ;;  %v1271_v5 = vmul.f32 %v1269_v59, %v1264_v50 }
0x1144   :  { %v1274_v49 = vpop.permute.xlu0 %1273 }
0x1145   :  { %v1276_v52 = vmul.f32 %v1274_v49, %v1264_v50 }
0x1147   :  { %1278 = vrot.lane.b32.xlu0 %v1276_v52, %s1776_s29 }
0x114a   :  { %v1353_v57 = vpop.permute.xlu1 %1352 }
0x114b   :  { %v1355_v58 = vmul.f32 %v1353_v57, %v1343_v56 }
0x114d   :  { %1357 = vrot.lane.b32.xlu2 %v1355_v58, %s1776_s29 }
0x1152   :  { %v1348_v60 = vpop.permute.xlu1 %1347 }
0x1153   :  { %v1350_v61 = vmul.f32 %v1348_v60, %v1343_v56 }
0x11a7   :  { %v1358_v62 = vpop.permute.xlu2 %1357 }
0x11a8   :  { %v1360_v63 = vadd.f32 %v1358_v62, %v1350_v61 }
0x11aa   :  { %1705 = vtanh.f32 %v1360_v63 }
0x11b0   :  { %v1706_v3 = vpop.eup %1705 }
0x11b1   :  { %1363 = vrot.lane.b32.xlu1 %v1706_v3, %s1775_s28 }
0x11b9   :  { %v1279_v6 = vpop.permute.xlu0 %1278 }
0x11ba   :  { %v1281_v7 = vadd.f32 %v1279_v6, %v1271_v5 }
0x11bc   :  { %1707 = vtanh.f32 %v1281_v7  ;;  %1294 = vrot.lane.b32.xlu1 %v1281_v7, %s1777_s15 }
0x11c2   :  { %v1708_v8 = vpop.eup %1707 }
0x11c3   :  { %1284 = vrot.lane.b32.xlu0 %v1708_v8, %s1775_s28 }
0x1223   :  { %v1364_v9 = vpop.permute.xlu1 %1363 }
0x1224   :  { %v1366_v10 = vmul.f32 %v1364_v9, %v1343_v56 }
0x1226   :  { %1368 = vrot.lane.b32.xlu0 %v1366_v10, %s1776_s29 }
0x122e   :  { %v1295_v11 = vpop.permute.xlu1 %1294 }
0x122f   :  { %1297 = vst.msk [vmem:[#allocation3 + $0x2] sm:$0x3] %vm25_vm0, %v1295_v11 }
0x1235   :  { %v1285_v12 = vpop.permute.xlu0 %1284 }
0x1236   :  { %v1287_v13 = vmul.f32 %v1285_v12, %v1264_v50  ;;  %v1378_v14 = vld [vmem:[#allocation3 + $0x2] sm:$0x3] }
0x1237   :  { %1446 = vrot.lane.b32.xlu0 %v1378_v14, %s1776_s29 }
0x1238   :  { %1289 = vrot.lane.b32.xlu2 %v1287_v13, %s1776_s29 }
0x1292   :  { %v1290_v15 = vpop.permute.xlu2 %1289 }
0x1293   :  { %1292 = vst.msk [vmem:[#allocation2 + $0x2] sm:$0x3] %vm25_vm0, %v1290_v15 }
0x1298   :  { %v1369_v16 = vpop.permute.xlu0 %1368 }
0x1299   :  { %1371 = vst.msk [vmem:[#allocation2] sm:$0x3] %vm25_vm0, %v1369_v16  ;;  %1579 = vmatmul.msk.f32.vlgmr.msrb.gmra.mxu3 %vm49_vm1, %v1369_v16 }
0x129a   :  { %v1377_v0 = vld [vmem:[#allocation2 + $0x2] sm:$0x3] }
0x129b   :  { %1578 = vmatmul.msk.f32.vlgmr.msrb.gmra.mxu2 %vm49_vm1, %v1377_v0 }
0x12a0   :  { %v1479_v1 = vld [vmem:[#allocation2] sm:$0x3] }
0x12a1   :  { %v1481_v2 = vmax.f32 %v1479_v1, 0.0 }
0x12a3   :  { %1483 = vst.msk [vmem:[#allocation4] sm:$0x3] %vm25_vm0, %v1481_v2 }
0x12a9   :  { %v1447_v28 = vpop.permute.xlu0 %1446 }
0x131c   :  { %v1421_v17 = vpop.f32.mrf.mxu3 }
0x131e   :  { %v1399_v18 = vpop.f32.mrf.mxu2 }
0x131f   :  { %v1422_v19 = vadd.f32 %v1421_v17, %v1399_v18 }
0x1321   :  { %v1424_v33 = vadd.f32 %v2117_v39, %v1422_v19 }
0x1323   :  { %1709 = vtanh.f32 %v1424_v33  ;;  %v1580_v31 = vmul.f32 -1.442695, %v1424_v33 }
0x1325   :  { %1711 = vpow2.f32 %v1580_v31 }
0x1329   :  { %v1710_v38 = vpop.eup %1709 }
0x132a   :  { %1451 = vrot.lane.b32.xlu2 %v1710_v38, %s1775_s28 }
0x132b   :  { %v1712_v32 = vpop.eup %1711 }
0x132c   :  { %v1428_v40 = vadd.f32 1.0, %v1712_v32 }
0x132e   :  { %1713 = vrcp.f32 %v1428_v40  ;;  %v1440_v23 = vand.u32 2147483648, %v1428_v40  ;;  %vm1434_vm6 = vweird.f32 %v1428_v40  ;;  %v1438_v35 = vand.u32 2147483647, %v1428_v40 }
0x1330   :  { %v1441_v24 = vor.u32 1.1754944e-38, %v1440_v23  ;;  %vm1439_vm8 = vcmp.eq.f32.partialorder %v1438_v35, 8.507059e+37 }
0x1334   :  { %v1714_v20 = vpop.eup %1713 }
0x1335   :  { %v1430_v4 = vmul.f32 %v1714_v20, %v1428_v40  ;;  %vm1435_vm1 = vweird.f32 %v1714_v20 }
0x1336   :  { %vm1436_vm7 = vmor %vm1434_vm6, %vm1435_vm1 }
0x1337   :  { %v1431_v34 = vsub.f32 1.0, %v1430_v4 }
0x1339   :  { %v1432_v21 = vmul.f32 %v1714_v20, %v1431_v34 }
0x133b   :  { %v1433_v22 = vadd.f32 %v1714_v20, %v1432_v21 }
0x133d   :  { %v1437_v39 = vsel %vm1436_vm7, %v1714_v20, %v1433_v22 }
0x133e   :  { %v1442_v26 = vsel %vm1439_vm8, %v1441_v24, %v1437_v39 }
0x133f   :  { %v1449_v47 = vmul.f32 %v1447_v28, %v1442_v26 }
0x1384   :  { %v1452_v25 = vpop.permute.xlu2 %1451 }
0x1385   :  { %v1454_v27 = vmul.f32 %v1452_v25, %v1442_v26 }
0x1387   :  { %1456 = vrot.lane.b32.xlu1 %v1454_v27, %s1776_s29 }
0x138f   :  { %1373 = vrot.lane.b32.xlu1 %v1360_v63, %s1777_s15 }
0x13f9   :  { %v1457_v29 = vpop.permute.xlu1 %1456 }
0x13fa   :  { %v1459_v30 = vadd.f32 %v1457_v29, %v1449_v47 }
0x13fc   :  { %1715 = vtanh.f32 %v1459_v30 }
0x1401   :  { %v1374_v36 = vpop.permute.xlu1 %1373 }
0x1402   :  { %v1716_v37 = vpop.eup %1715  ;;  %1376 = vst.msk [vmem:[#allocation3] sm:$0x3] %vm25_vm0, %v1374_v36 }
0x1403   :  { %1462 = vrot.lane.b32.xlu2 %v1716_v37, %s1775_s28  ;;  %s1779_s28 = smov 2  }
0x1409   :  { %v1485_v41 = vld [vmem:[#allocation3] sm:$0x3] }
0x140a   :  { %1487 = vst.msk [vmem:[#allocation6] sm:$0x3] %vm25_vm0, %v1485_v41 }
0x140b   :  { %1472 = vrot.lane.b32.xlu2 %v1459_v30, %s1777_s15  ;;  %s1780_s15 = smov [#allocation4]  }
0x140c   :  { %s1493_s26 = sshll.u32 %s1780_s15, 4  ;;  %s1494_s26 = int_to_ptr.vmem [resolvable:$true] %s1493_s26 }
0x145d   :  { %v1463_v42 = vpop.permute.xlu2 %1462 }
0x145e   :  { %v1465_v43 = vmul.f32 %v1463_v42, %v1442_v26 }
0x1460   :  { %1467 = vrot.lane.b32.xlu0 %v1465_v43, %s1776_s29 }
0x1465   :  { %v1473_v44 = vpop.permute.xlu2 %1472 }
0x1466   :  { %1475 = vst.msk [vmem:[#allocation3 + $0x2] sm:$0x3] %vm25_vm0, %v1473_v44 }
0x146d   :  { %v1486_v45 = vld [vmem:[#allocation3 + $0x2] sm:$0x3] }
0x146e   :  { %1488 = vst.msk [vmem:[#allocation6 + $0x2] sm:$0x3] %vm25_vm0, %v1486_v45 }
0x146f   :  { %1514 = dma.vmem_to_hbm [thread:$0]  %s1507_s22, 64, %s1509_s25, [#allocation7], %s1776_s29, %s1776_s29, %s1779_s28  }
0x14d2   :  { %v1468_v46 = vpop.permute.xlu0 %1467 }
0x14d3   :  { %1470 = vst.msk [vmem:[#allocation2 + $0x2] sm:$0x3] %vm25_vm0, %v1468_v46 }
0x14da   :  { %v1480_v48 = vld [vmem:[#allocation2 + $0x2] sm:$0x3] }
0x14db   :  { %v1482_v49 = vmax.f32 %v1480_v48, 0.0 }
0x14dd   :  { %1484 = vst.msk [vmem:[#allocation4 + $0x2] sm:$0x3] %vm25_vm0, %v1482_v49 }
0x14de   :  { %1501 = dma.vmem_to_hbm [thread:$0]  %s1494_s26, 64, %s1496_s6, [#allocation5], %s1776_s29, %s1776_s29, %s1779_s28  }
0x14df   :  { %1770 = dma.done.wait [#allocation5], 64  }
0x14e0   :  { %1771 = vsyncadd [#allocation5], 4294967232 }
0x14e1   :  { %1772 = dma.done.wait [#allocation7], 64  }
0x14e2   :  { %1773 = vsyncadd [#allocation7], 4294967232 }
0x14e3   :  { %1523 = vsyncpa [#allocation5], 1 }
0x14e4   :  { %1524 = vsyncpa [#allocation7], 1 }

</bundles_post_ra>
